<compile_context>
chip_gen: v6e
topology: v6e:2x2x1
jax: 0.10.0
libtpu: 0.0.40
codegen_flags: <defaults>
</compile_context>

<pallas_src>
import math

import jax
import jax.numpy as jnp
from jax.experimental import pallas as pl
from jax.experimental.pallas import tpu as pltpu


# ----------------------------- configuration --------------------------------
B = 2                 # batch size
N = 128               # points per cloud
C_PT = 4              # point channels: xyz + 1 feature
HIDDEN = 128          # backbone feature width
NUM_CLS = 3           # KITTI: Car / Pedestrian / Cyclist
ANCHORS_NUM = 1       # anchor-free style (one anchor per point)
ANGLE_CLS_NUM = 12    # heading bins
OFFSET_DIM = 6        # (dx, dy, dz, dl, dw, dh) per anchor
ANCHOR_SIZE = (3.9, 1.6, 1.56)   # (l, w, h) of the single anchor template

# packed output-slab lane layout (all lane-dense in one (M, 128) array)
S_CLS = 0                               # 3  cls logits
S_OFF = S_CLS + NUM_CLS                 # 6  offset residuals
S_ACLS = S_OFF + OFFSET_DIM             # 12 angle-cls logits
S_ARES = S_ACLS + ANGLE_CLS_NUM         # 12 angle residuals
S_SCORE = S_ARES + ANGLE_CLS_NUM        # 3  sigmoid scores   (== 33)
S_BOX = S_SCORE + NUM_CLS               # 7  decoded boxes    (== 36)
SLAB_USED = S_BOX + 7                   # 43 lanes carry data
SLAB_W = 128                            # padded to one full lane width


def _pick_tile(m):
    """Largest row tile that divides M, preferring big tiles (amortize the
    ~0.35us per-grid-step overhead) but capped at M//2 so the grid has at
    least 2 steps and v7x's second TensorCore gets work."""
    cap = max(m // 2, 8)
    for t in (4096, 2048, 1024, 512, 256, 128, 64, 32, 16, 8):
        if t <= cap and m % t == 0:
            return t
    return m  # fallback: single full tile (block == full array is always legal)


# ------------------------------ Pallas kernel --------------------------------
def detector_fused_kernel(pts_ref, w1_ref, b1_ref, w2_ref, b2_ref,
                          wh_ref, bh_ref, feat_ref, slab_ref):
    """Backbone shared-MLP + fused heads + sigmoid score + box decode, per row tile."""
    x = pts_ref[...].astype(jnp.float32)                        # (TM, C_PT) f32

    # ---- layer 1: Conv1d(k=1), K=4 -> one tiny MXU pass (MXU is idle here) ----
    h1 = jnp.dot(x, w1_ref[...],
                 preferred_element_type=jnp.float32) + b1_ref[...]
    h1 = jnp.maximum(h1, 0.0)                                   # (TM, HIDDEN) f32

    # ---- layer 2: 128x128 MXU matmul, bf16 operands, f32 accumulation ----
    h2 = jnp.dot(h1.astype(jnp.bfloat16), w2_ref[...],
                 preferred_element_type=jnp.float32) + b2_ref[...]
    h2 = jnp.maximum(h2, 0.0)                                   # (TM, HIDDEN) f32
    h2_bf = h2.astype(jnp.bfloat16)
    feat_ref[...] = h2_bf                                       # bf16 writeback (half HBM bytes)

    # ---- fused heads: ONE 128-lane matmul for cls/offset/angle_cls/angle_res ----
    # Lanes >= 33 of w_head / b_head are exactly zero, so `head` already carries
    # zeros in the padding lanes: it IS the output slab for the raw predictions.
    head = jnp.dot(h2_bf, wh_ref[...],
                   preferred_element_type=jnp.float32) + bh_ref[...]   # (TM, 128)
    slab_ref[...] = head                                        # one unmasked 128-lane store

    cls = head[:, S_CLS:S_CLS + NUM_CLS]
    off = head[:, S_OFF:S_OFF + OFFSET_DIM]
    acls = head[:, S_ACLS:S_ACLS + ANGLE_CLS_NUM]
    ares = head[:, S_ARES:S_ARES + ANGLE_CLS_NUM]

    # classification score (Sigmoid activation, as in test_forward)
    score = jax.nn.sigmoid(cls)

    # ---- box decode, fused (anchor template is a compile-time constant) ----
    # TODO(synk): exact EncoderDecoder of the original repo is not given; this is
    # the standard 3DSSD-style residual decode (center + log-size + binned heading).
    ctr = x[:, 0:3] + off[:, 0:3]                               # (TM, 3)
    esz = jnp.exp(off[:, 3:6])                                  # (TM, 3)

    idx = jnp.argmax(acls, axis=-1, keepdims=True)              # (TM, 1)
    lane = jax.lax.broadcasted_iota(jnp.int32, acls.shape, 1)
    onehot = (lane == idx).astype(jnp.float32)
    res_sel = jnp.sum(onehot * ares, axis=-1, keepdims=True)    # residual at argmax bin
    heading = idx.astype(jnp.float32) * (2.0 * math.pi / ANGLE_CLS_NUM) + res_sel

    # single small (10-lane) sub-slice store with the decoded / activated lanes
    decoded = jnp.concatenate(
        [score,                                  # 3
         ctr,                                    # 3
         ANCHOR_SIZE[0] * esz[:, 0:1],           # l
         ANCHOR_SIZE[1] * esz[:, 1:2],           # w
         ANCHOR_SIZE[2] * esz[:, 2:3],           # h
         heading],                               # 1
        axis=-1)                                 # (TM, 10)
    slab_ref[:, S_SCORE:SLAB_USED] = decoded


# ------------------------------ wrappers -------------------------------------
def run_detector(pts_flat, params):
    M = pts_flat.shape[0]
    tm = _pick_tile(M)
    grid = (M // tm,)

    def _full(shape):
        return pl.BlockSpec(shape, lambda i: tuple(0 for _ in shape))

    feat, slab = pl.pallas_call(
        detector_fused_kernel,
        out_shape=(
            jax.ShapeDtypeStruct((M, HIDDEN), jnp.bfloat16),  # backbone features (bf16 writeback)
            jax.ShapeDtypeStruct((M, SLAB_W), jnp.float32),   # packed predictions
        ),
        grid=grid,
        in_specs=[
            pl.BlockSpec((tm, C_PT), lambda i: (i, 0)),
            _full(params["w1"].shape), _full(params["b1"].shape),
            _full(params["w2"].shape), _full(params["b2"].shape),
            _full(params["w_head"].shape), _full(params["b_head"].shape),
        ],
        out_specs=(
            pl.BlockSpec((tm, HIDDEN), lambda i: (i, 0)),
            pl.BlockSpec((tm, SLAB_W), lambda i: (i, 0)),
        ),
        compiler_params=pltpu.CompilerParams(
            # row tiles are independent -> megacore sharding on v7x
            dimension_semantics=("parallel",),
            # headroom for double-buffered tiles up to tm=4096 on every gen
            # (needed ~= 2 * tm * (512 + 256 + 512) B ~= 10 MiB at tm=4096)
            vmem_limit_bytes=32 * 1024 * 1024,
        ),
    )(
        pts_flat,
        params["w1"], params["b1"],
        params["w2"], params["b2"],
        params["w_head"], params["b_head"],
    )
    return feat, slab


def generate_anchors(base_xyz):
    """Anchors(..).generate: one anchor template centered on each output point."""
    B_, N_, _ = base_xyz.shape
    size = jnp.broadcast_to(jnp.asarray(ANCHOR_SIZE, jnp.float32), (B_, N_, 3))
    ry = jnp.zeros((B_, N_, 1), jnp.float32)
    return jnp.concatenate([base_xyz, size, ry], axis=-1)        # (B, N, 7)


def single_stage_detector_forward(point_cloud, params):
    """Inference (is_training=False) forward pass. Returns an end_points dict."""
    B_, N_, _ = point_cloud.shape
    M = B_ * N_

    pts_flat = point_cloud.reshape(M, C_PT).astype(jnp.float32)
    feat, slab = run_detector(pts_flat, params)

    base_xyz = point_cloud[:, :, 0:3].astype(jnp.float32)        # (B, N, 3)
    anchors = generate_anchors(base_xyz)                         # (B, N, 7)

    # split the packed slab back into named predictions (plain JAX, cheap)
    cls_logits = slab[:, S_CLS:S_CLS + NUM_CLS]
    offset = slab[:, S_OFF:S_OFF + OFFSET_DIM]
    angle_cls = slab[:, S_ACLS:S_ACLS + ANGLE_CLS_NUM]
    angle_res = slab[:, S_ARES:S_ARES + ANGLE_CLS_NUM]
    score = slab[:, S_SCORE:S_SCORE + NUM_CLS]
    boxes = slab[:, S_BOX:S_BOX + 7]

    end_points = {
        "key_output_xyz": base_xyz,
        "key_output_feature": feat.reshape(B_, N_, HIDDEN),      # bf16 features
        "anchors_3d": anchors.reshape(B_, N_, ANCHORS_NUM, 7),
        "pred_cls": cls_logits.reshape(B_, N_, NUM_CLS),
        "pred_offset": offset.reshape(B_, N_, ANCHORS_NUM, OFFSET_DIM),
        "pred_angle_cls": angle_cls.reshape(B_, N_, ANCHORS_NUM, ANGLE_CLS_NUM),
        "pred_angle_res": angle_res.reshape(B_, N_, ANCHORS_NUM, ANGLE_CLS_NUM),
        "pred_3d_bbox": boxes.reshape(B_, N_, ANCHORS_NUM, 7),
        "pred_3d_score": score.reshape(B_, N_, NUM_CLS),
    }
    # TODO(synk): PostProcessor (NMS / top-k selection) and the training branch
    # (TargetAssigner + LossBuilder + corner loss) have no self-contained Pallas
    # equivalent here.
    return end_points


# --------------------------------- params ------------------------------------
def init_params(key):
    ks = jax.random.split(key, 6)

    def dense(k, cin, cout, dtype=jnp.float32):
        return (jax.random.normal(k, (cin, cout), jnp.float32) /
                math.sqrt(cin)).astype(dtype)

    # fused head weight: cls(3) | offset(6) | angle_cls(12) | angle_res(12),
    # zero-padded to 128 columns (the zero padding lanes make `head` directly
    # usable as the output slab inside the kernel).
    w_head = jnp.zeros((HIDDEN, SLAB_W), jnp.float32)
    w_head = w_head.at[:, S_CLS:S_CLS + NUM_CLS].set(dense(ks[2], HIDDEN, NUM_CLS))
    w_head = w_head.at[:, S_OFF:S_OFF + OFFSET_DIM].set(dense(ks[3], HIDDEN, OFFSET_DIM))
    w_head = w_head.at[:, S_ACLS:S_ACLS + ANGLE_CLS_NUM].set(dense(ks[4], HIDDEN, ANGLE_CLS_NUM))
    w_head = w_head.at[:, S_ARES:S_ARES + ANGLE_CLS_NUM].set(dense(ks[5], HIDDEN, ANGLE_CLS_NUM))

    return {
        "w1": dense(ks[0], C_PT, HIDDEN),                       # f32, K=4 MXU pass
        "b1": jnp.zeros((1, HIDDEN), jnp.float32),
        "w2": dense(ks[1], HIDDEN, HIDDEN, jnp.bfloat16),       # bf16 MXU operand
        "b2": jnp.zeros((1, HIDDEN), jnp.float32),
        "w_head": w_head.astype(jnp.bfloat16),                  # bf16 MXU operand
        "b_head": jnp.zeros((1, SLAB_W), jnp.float32),          # fused lane-dense bias
    }


# ---------------------------------- main --------------------------------------
if __name__ == "__main__":
    key = jax.random.PRNGKey(0)
    k_pc, k_params = jax.random.split(key)

    # batch['point_cloud_pl']: (B, N, 3 + C_feat)
    point_cloud = jax.random.normal(k_pc, (B, N, C_PT), jnp.float32)
    params = init_params(k_params)

    end_points = jax.jit(single_stage_detector_forward)(point_cloud, params)
    end_points = jax.block_until_ready(end_points)

    # light sanity checks on shapes / values
    assert end_points["pred_3d_bbox"].shape == (B, N, ANCHORS_NUM, 7)
    assert end_points["pred_3d_score"].shape == (B, N, NUM_CLS)
    assert end_points["pred_cls"].shape == (B, N, NUM_CLS)
    assert end_points["key_output_feature"].shape == (B, N, HIDDEN)
    assert bool(jnp.all(jnp.isfinite(end_points["pred_3d_bbox"])))
    assert bool(jnp.all(end_points["pred_3d_score"] >= 0.0))
    assert bool(jnp.all(end_points["pred_3d_score"] <= 1.0))

    print("KERNEL_OK")
</pallas_src>

<mosaic_0001>
module attributes {stable_mosaic.version = 11 : i64} {
  func.func @detector_fused_kernel(%arg0: i32, %arg1: memref<128x4xf32, #tpu.memory_space<vmem>>, %arg2: memref<4x128xf32, #tpu.memory_space<vmem>>, %arg3: memref<1x128xf32, #tpu.memory_space<vmem>>, %arg4: memref<128x128xbf16, #tpu.memory_space<vmem>>, %arg5: memref<1x128xf32, #tpu.memory_space<vmem>>, %arg6: memref<128x128xbf16, #tpu.memory_space<vmem>>, %arg7: memref<1x128xf32, #tpu.memory_space<vmem>>, %arg8: memref<128x128xbf16, #tpu.memory_space<vmem>>, %arg9: memref<128x128xf32, #tpu.memory_space<vmem>>) attributes {dimension_semantics = [#tpu.dimension_semantics<parallel>], iteration_bounds = array<i64: 2>, scalar_prefetch = 0 : i64, scratch_operands = 0 : i64, tpu.core_type = #tpu.core_type<tc>, window_params = [{transform_indices = @transform_0, window_bounds = array<i64: 128, 4>}, {pipeline_mode = #tpu.pipeline_mode<synchronous>, transform_indices = @transform_1, window_bounds = array<i64: 4, 128>}, {pipeline_mode = #tpu.pipeline_mode<synchronous>, transform_indices = @transform_2, window_bounds = array<i64: 1, 128>}, {pipeline_mode = #tpu.pipeline_mode<synchronous>, transform_indices = @transform_3, window_bounds = array<i64: 128, 128>}, {pipeline_mode = #tpu.pipeline_mode<synchronous>, transform_indices = @transform_4, window_bounds = array<i64: 1, 128>}, {pipeline_mode = #tpu.pipeline_mode<synchronous>, transform_indices = @transform_5, window_bounds = array<i64: 128, 128>}, {pipeline_mode = #tpu.pipeline_mode<synchronous>, transform_indices = @transform_6, window_bounds = array<i64: 1, 128>}, {transform_indices = @transform_7, window_bounds = array<i64: 128, 128>}, {transform_indices = @transform_8, window_bounds = array<i64: 128, 128>}]} {
    %c0 = arith.constant 0 : index
    %c0_0 = arith.constant 0 : index
    %0 = vector.load %arg1[%c0, %c0_0] : memref<128x4xf32, #tpu.memory_space<vmem>>, vector<128x4xf32>
    %c0_1 = arith.constant 0 : index
    %c0_2 = arith.constant 0 : index
    %1 = vector.load %arg2[%c0_1, %c0_2] : memref<4x128xf32, #tpu.memory_space<vmem>>, vector<4x128xf32>
    %cst = arith.constant dense<0.000000e+00> : vector<128x128xf32>
    %2 = tpu.matmul %0, %1, %cst {dimension_numbers = #tpu.dot_dimension_numbers<[1], [0], [0], [1], [0, 0, 1, 1], [], []>} : vector<128x4xf32>, vector<4x128xf32>, vector<128x128xf32> -> vector<128x128xf32>
    %c0_3 = arith.constant 0 : index
    %c0_4 = arith.constant 0 : index
    %3 = vector.load %arg3[%c0_3, %c0_4] : memref<1x128xf32, #tpu.memory_space<vmem>>, vector<1x128xf32>
    %4 = vector.broadcast %3 : vector<1x128xf32> to vector<128x128xf32>
    %5 = arith.addf %2, %4 : vector<128x128xf32>
    %cst_5 = arith.constant 0.000000e+00 : f32
    %6 = vector.broadcast %cst_5 : f32 to vector<128x128xf32>
    %7 = arith.maximumf %5, %6 : vector<128x128xf32>
    %8 = arith.truncf %7 : vector<128x128xf32> to vector<128x128xbf16>
    %c0_6 = arith.constant 0 : index
    %c0_7 = arith.constant 0 : index
    %9 = vector.load %arg4[%c0_6, %c0_7] : memref<128x128xbf16, #tpu.memory_space<vmem>>, vector<128x128xbf16>
    %cst_8 = arith.constant dense<0.000000e+00> : vector<128x128xf32>
    %10 = tpu.matmul %8, %9, %cst_8 {dimension_numbers = #tpu.dot_dimension_numbers<[1], [0], [0], [1], [0, 0, 1, 1], [], []>} : vector<128x128xbf16>, vector<128x128xbf16>, vector<128x128xf32> -> vector<128x128xf32>
    %c0_9 = arith.constant 0 : index
    %c0_10 = arith.constant 0 : index
    %11 = vector.load %arg5[%c0_9, %c0_10] : memref<1x128xf32, #tpu.memory_space<vmem>>, vector<1x128xf32>
    %12 = vector.broadcast %11 : vector<1x128xf32> to vector<128x128xf32>
    %13 = arith.addf %10, %12 : vector<128x128xf32>
    %cst_11 = arith.constant 0.000000e+00 : f32
    %14 = vector.broadcast %cst_11 : f32 to vector<128x128xf32>
    %15 = arith.maximumf %13, %14 : vector<128x128xf32>
    %16 = arith.truncf %15 : vector<128x128xf32> to vector<128x128xbf16>
    %c0_12 = arith.constant 0 : index
    %c0_13 = arith.constant 0 : index
    %17 = vector.load %arg8[%c0_12, %c0_13] : memref<128x128xbf16, #tpu.memory_space<vmem>>, vector<128x128xbf16>
    tpu.vector_store %arg8[%c0_12, %c0_13], %16 {strides = array<i32>} : memref<128x128xbf16, #tpu.memory_space<vmem>>, vector<128x128xbf16>,
    %c0_14 = arith.constant 0 : index
    %c0_15 = arith.constant 0 : index
    %18 = vector.load %arg6[%c0_14, %c0_15] : memref<128x128xbf16, #tpu.memory_space<vmem>>, vector<128x128xbf16>
    %cst_16 = arith.constant dense<0.000000e+00> : vector<128x128xf32>
    %19 = tpu.matmul %16, %18, %cst_16 {dimension_numbers = #tpu.dot_dimension_numbers<[1], [0], [0], [1], [0, 0, 1, 1], [], []>} : vector<128x128xbf16>, vector<128x128xbf16>, vector<128x128xf32> -> vector<128x128xf32>
    %c0_17 = arith.constant 0 : index
    %c0_18 = arith.constant 0 : index
    %20 = vector.load %arg7[%c0_17, %c0_18] : memref<1x128xf32, #tpu.memory_space<vmem>>, vector<1x128xf32>
    %21 = vector.broadcast %20 : vector<1x128xf32> to vector<128x128xf32>
    %22 = arith.addf %19, %21 : vector<128x128xf32>
    %c0_19 = arith.constant 0 : index
    %c0_20 = arith.constant 0 : index
    %23 = vector.load %arg9[%c0_19, %c0_20] : memref<128x128xf32, #tpu.memory_space<vmem>>, vector<128x128xf32>
    tpu.vector_store %arg9[%c0_19, %c0_20], %22 {strides = array<i32>} : memref<128x128xf32, #tpu.memory_space<vmem>>, vector<128x128xf32>,
    %24 = vector.extract_strided_slice %22 {offsets = [0, 0], sizes = [128, 3], strides = [1, 1]} : vector<128x128xf32> to vector<128x3xf32>
    %25 = vector.extract_strided_slice %22 {offsets = [0, 3], sizes = [128, 6], strides = [1, 1]} : vector<128x128xf32> to vector<128x6xf32>
    %26 = vector.extract_strided_slice %22 {offsets = [0, 9], sizes = [128, 12], strides = [1, 1]} : vector<128x128xf32> to vector<128x12xf32>
    %27 = vector.extract_strided_slice %22 {offsets = [0, 21], sizes = [128, 12], strides = [1, 1]} : vector<128x128xf32> to vector<128x12xf32>
    %28 = arith.negf %24 : vector<128x3xf32>
    %29 = math.exp %28 : vector<128x3xf32>
    %cst_21 = arith.constant 1.000000e+00 : f32
    %30 = vector.broadcast %cst_21 : f32 to vector<128x3xf32>
    %31 = arith.addf %30, %29 : vector<128x3xf32>
    %32 = arith.divf %30, %31 : vector<128x3xf32>
    %33 = vector.extract_strided_slice %0 {offsets = [0, 0], sizes = [128, 3], strides = [1, 1]} : vector<128x4xf32> to vector<128x3xf32>
    %34 = vector.extract_strided_slice %25 {offsets = [0, 0], sizes = [128, 3], strides = [1, 1]} : vector<128x6xf32> to vector<128x3xf32>
    %35 = arith.addf %33, %34 : vector<128x3xf32>
    %36 = vector.extract_strided_slice %25 {offsets = [0, 3], sizes = [128, 3], strides = [1, 1]} : vector<128x6xf32> to vector<128x3xf32>
    %37 = math.exp %36 : vector<128x3xf32>
    %38 = tpu.reduce_index %26 {axis = 1 : i32, kind = #tpu.reduction_kind<arg_max>} : vector<128x12xf32> -> vector<128xi32>
    %39 = vector.shape_cast %38 : vector<128xi32> to vector<128x1xi32>
    %40 = tpu.iota {dimensions = array<i32: 1>} : vector<128x12xi32>
    %41 = vector.broadcast %39 : vector<128x1xi32> to vector<128x12xi32>
    %42 = arith.cmpi eq, %40, %41 : vector<128x12xi32>
    %43 = arith.extui %42 : vector<128x12xi1> to vector<128x12xi32>
    %44 = arith.sitofp %43 : vector<128x12xi32> to vector<128x12xf32>
    %45 = arith.mulf %44, %27 : vector<128x12xf32>
    %cst_22 = arith.constant dense<0.000000e+00> : vector<128xf32>
    %46 = vector.multi_reduction <add>, %45, %cst_22 [1] : vector<128x12xf32> to vector<128xf32>
    %47 = vector.shape_cast %46 : vector<128xf32> to vector<128x1xf32>
    %48 = arith.sitofp %39 : vector<128x1xi32> to vector<128x1xf32>
    %cst_23 = arith.constant 0.52359879 : f32
    %49 = vector.broadcast %cst_23 : f32 to vector<128x1xf32>
    %50 = arith.mulf %48, %49 : vector<128x1xf32>
    %51 = arith.addf %50, %47 : vector<128x1xf32>
    %52 = vector.extract_strided_slice %37 {offsets = [0, 0], sizes = [128, 1], strides = [1, 1]} : vector<128x3xf32> to vector<128x1xf32>
    %cst_24 = arith.constant 3.900000e+00 : f32
    %53 = vector.broadcast %cst_24 : f32 to vector<128x1xf32>
    %54 = arith.mulf %53, %52 : vector<128x1xf32>
    %55 = vector.extract_strided_slice %37 {offsets = [0, 1], sizes = [128, 1], strides = [1, 1]} : vector<128x3xf32> to vector<128x1xf32>
    %cst_25 = arith.constant 1.600000e+00 : f32
    %56 = vector.broadcast %cst_25 : f32 to vector<128x1xf32>
    %57 = arith.mulf %56, %55 : vector<128x1xf32>
    %58 = vector.extract_strided_slice %37 {offsets = [0, 2], sizes = [128, 1], strides = [1, 1]} : vector<128x3xf32> to vector<128x1xf32>
    %cst_26 = arith.constant 1.560000e+00 : f32
    %59 = vector.broadcast %cst_26 : f32 to vector<128x1xf32>
    %60 = arith.mulf %59, %58 : vector<128x1xf32>
    %61 = tpu.concatenate %32, %35, %54, %57, %60, %51 in 1 : vector<128x3xf32>, vector<128x3xf32>, vector<128x1xf32>, vector<128x1xf32>, vector<128x1xf32>, vector<128x1xf32> -> vector<128x10xf32>
    %c0_27 = arith.constant 0 : index
    %c33 = arith.constant 33 : index
    %62 = vector.load %arg9[%c0_27, %c33] : memref<128x128xf32, #tpu.memory_space<vmem>>, vector<128x10xf32>
    tpu.vector_store %arg9[%c0_27, %c33], %61 {strides = array<i32>} : memref<128x128xf32, #tpu.memory_space<vmem>>, vector<128x10xf32>,
    return
  }
  func.func @transform_0(%arg0: i32) -> (i32, i32) {
    %c0_i32 = arith.constant 0 : i32
    %c0_i32_0 = arith.constant 0 : i32
    return %arg0, %c0_i32 : i32, i32
  }
  func.func @transform_1(%arg0: i32) -> (i32, i32) {
    %c0_i32 = arith.constant 0 : i32
    %c0_i32_0 = arith.constant 0 : i32
    %c0_i32_1 = arith.constant 0 : i32
    return %c0_i32, %c0_i32_0 : i32, i32
  }
  func.func @transform_2(%arg0: i32) -> (i32, i32) {
    %c0_i32 = arith.constant 0 : i32
    %c0_i32_0 = arith.constant 0 : i32
    %c0_i32_1 = arith.constant 0 : i32
    return %c0_i32, %c0_i32_0 : i32, i32
  }
  func.func @transform_3(%arg0: i32) -> (i32, i32) {
    %c0_i32 = arith.constant 0 : i32
    %c0_i32_0 = arith.constant 0 : i32
    %c0_i32_1 = arith.constant 0 : i32
    return %c0_i32, %c0_i32_0 : i32, i32
  }
  func.func @transform_4(%arg0: i32) -> (i32, i32) {
    %c0_i32 = arith.constant 0 : i32
    %c0_i32_0 = arith.constant 0 : i32
    %c0_i32_1 = arith.constant 0 : i32
    return %c0_i32, %c0_i32_0 : i32, i32
  }
  func.func @transform_5(%arg0: i32) -> (i32, i32) {
    %c0_i32 = arith.constant 0 : i32
    %c0_i32_0 = arith.constant 0 : i32
    %c0_i32_1 = arith.constant 0 : i32
    return %c0_i32, %c0_i32_0 : i32, i32
  }
  func.func @transform_6(%arg0: i32) -> (i32, i32) {
    %c0_i32 = arith.constant 0 : i32
    %c0_i32_0 = arith.constant 0 : i32
    %c0_i32_1 = arith.constant 0 : i32
    return %c0_i32, %c0_i32_0 : i32, i32
  }
  func.func @transform_7(%arg0: i32) -> (i32, i32) {
    %c0_i32 = arith.constant 0 : i32
    %c0_i32_0 = arith.constant 0 : i32
    return %arg0, %c0_i32 : i32, i32
  }
  func.func @transform_8(%arg0: i32) -> (i32, i32) {
    %c0_i32 = arith.constant 0 : i32
    %c0_i32_0 = arith.constant 0 : i32
    return %arg0, %c0_i32 : i32, i32
  }
}

</mosaic_0001>

<bundles_post_ra>
// kernel: single_stage_detector_forward.1
= control target key start
LH: loop header
LB: loop body
LE: loop exit
PB: predicated region body
PF: predicated region fallthrough
CT: control target
= control target key end

     0   :  { %14 = vsyncpa [#allocation3], 0  ;;  %s3385_s0 = inlined_call_operand.vmem [shape: f32[256,4], index: 0, kind: input, shape index: {}]   ;;  %s3386_s1 = inlined_call_operand.vmem [shape: f32[4,128], index: 1, kind: input, shape index: {}]   ;;  %s3387_s2 = inlined_call_operand.vmem [shape: f32[1,128], index: 2, kind: input, shape index: {}]   ;;  %s3388_s3 = inlined_call_operand.vmem [shape: bf16[128,128], index: 3, kind: input, shape index: {}]   ;;  %s3389_s4 = inlined_call_operand.vmem [shape: f32[1,128], index: 4, kind: input, shape index: {}]   ;;  %s3390_s5 = inlined_call_operand.vmem [shape: bf16[128,128], index: 5, kind: input, shape index: {}]   ;;  %s3391_s6 = inlined_call_operand.vmem [shape: f32[1,128], index: 6, kind: input, shape index: {}]   ;;  %s3392_s7 = inlined_call_operand.hbm [shape: bf16[256,128], index: 7, kind: output, shape index: {0}]   ;;  %s3393_s8 = inlined_call_operand.vmem [shape: f32[256,128], index: 8, kind: output, shape index: {1}]  }
   0x1   :  { %16 = vsyncpa [#allocation3 + $0x1], 0  ;;  %s2501_s27 = smov 0   ;;  %s2503_s28 = smov 0  }
   0x2   :  { %s2505_s29 = smov 0   ;;  %s2507_s30 = smov 0  }
   0x3 LB: > { %s2522_s9 = sadd.s32 4294967295, %s2445_s30   ;;  %s1919_s10 = sadd.s32 4294967294, %s2445_s30   ;;  %s2445_s30 = sphi %s2507_s30, %s3399_s30   ;;  %s2441_s29 = sphi %s2505_s29, %s3398_s29   ;;  %s2437_s28 = sphi %s2503_s28, %s3397_s28   ;;  %s2433_s27 = sphi %s2501_s27, %s3396_s27  }
   0x4   : > { %s2526_s11 = sadd.s32 1, %s2445_s30   ;;  %s181_s12 = sadd.s32 1, %s2441_s29 }
   0x5   : > { %s178_s13 = ssub.s32 %s2445_s30, %s2526_s11  ;;  %p191_p0 = scmp.ne.s32.totalorder %s2441_s29, %s2437_s28 }
   0x6   : > { %p179_p1 = scmp.eq.s32.totalorder %s178_s13, 0  ;;  %p192_p2 = scmp.eq.s32.totalorder %s2522_s9, 1 }
   0x7   : > { %p197_p3 = scmp.ne.s32.totalorder %s2437_s28, %s2433_s27  ;;  %p198_p4 = scmp.eq.s32.totalorder %s1919_s10, 1 }
   0x8   : > { %s2537_s14 = scalar_select %p179_p1, %s2441_s29, %s181_s12  }
   0x9   : > { %p2539_p5 = por %p192_p2, %p191_p0  ;;  %p2543_p6 = por %p198_p4, %p197_p3 }
   0xa   : > { %p1922_p7 = scmp.ge.s32.totalorder %s2445_s30, 1  ;;  %p269_p8 = scmp.lt.s32.totalorder %s2445_s30, 3 }
   0xc   : > { %p270_p9 = pnand %p1922_p7, %p269_p8 }
   0xd   : > { %s1924_s19 = sshll.u32 (!%p270_p9), %s2522_s9, 4  ;;  %s298_s17 = sand.u32 (!%p270_p9), 1, %s2437_s28  }
   0xe   : > { %273 = sbr.rel (%p270_p9) target bundleno = 1348 (0x544), region = 48  ;;  %p309_p10 = scmp.lt.s32.totalorder (!%p270_p9), %s1924_s19, 31 }
   0xf   : > { %s1923_s18 = sshll.u32 (!%p270_p9), %s298_s17, 6  ;;  %s2449_s10 = smov (!%p270_p9), 107  }
  0x10   : > { %s2698_s20 = scalar_lea.vmem (!%p270_p9), [#allocation2], %s1923_s18  ;;  %s2450_s12 = smov (!%p270_p9), 3  }
  0x11   : > { %s2452_s18 = smov (!%p270_p9), 33   ;;  %s1828_s21 = sshll.u32 (!%p270_p9), %s2698_s20, 4  ;;  %s3300_s21 = int_to_ptr.vmem [resolvable:$true] %s1828_s21 }
  0x13   : > { %v338_v0 = vld [vmem:[%s3386_s1] sm:$0xf]  ;;  %vm395_vm0 = vcmask 1043456   ;;  %v2267_v1 = vld [vmem:[%s3388_s3 + $0x38] sm:$0xff]   ;;  %v2268_v2 = vld [vmem:[%s3388_s3 + $0x30] sm:$0xff]   ;;  %s3401_s19 = smov (!%p309_p10, %s1924_s19), 31 }
  0x14   : > { %2130 = vmatprep.subr.msk.mxu0 %vm395_vm0, %v338_v0  ;;  %2156 = vmatprep.subr.bf16.mxu1 %v2267_v1  ;;  %v2269_v3 = vld [vmem:[%s3388_s3 + $0x28] sm:$0xff]   ;;  %s1925_s26 = sshll.u32 %s3401_s19, 3  ;;  %vm346_vm1 = vcmask 31744   ;;  %v2270_v7 = vld [vmem:[%s3388_s3 + $0x20] sm:$0xff]   ;;  %v2271_v10 = vld [vmem:[%s3388_s3 + $0x18] sm:$0xff]   ;;  %s2447_s19 = smov 125  }
  0x15   : > { %2131 = vmatpush3.msk.msra.mxu0 %vm395_vm0, %v338_v0  ;;  %2157 = vmatpush3.bf16.msra.mxu1 %v2267_v1  ;;  %s2570_s13 = scalar_lea.vmem %s3385_s0, %s1925_s26  ;;  %v2272_v22 = vld [vmem:[%s3388_s3 + $0x10] sm:$0xff]   ;;  %v2273_v23 = vld [vmem:[%s3388_s3 + $0x8] sm:$0xff]   ;;  %v2274_v24 = vld [vmem:[%s3388_s3] sm:$0xff]   ;;  %s2729_s25 = scalar_lea.vmem %s3393_s8, %s1925_s26  ;;  %vm1272_vm2 = vcmask 97280   ;;  %vm1643_vm3 = vcmask 23552   ;;  %vm1660_vm4 = vcmask 48128  }
  0x16   : > { %2158 = vmatprep.subr.bf16.mxu1 %v2268_v2  ;;  %v2573_v4 = vld [vmem:[%s2570_s13] sm:$0xff]  ;;  %v2576_v5 = vld [vmem:[%s2570_s13 + $0x8] sm:$0xff]  ;;  %v2579_v6 = vld [vmem:[%s2570_s13 + $0x10] sm:$0xff]  ;;  %s2448_s26 = smov 119   ;;  %vm1677_vm5 = vcmask 56320   ;;  %vm1694_vm6 = vcmask 64512  }
  0x17   : > { %2132 = vmatprep.mubr.msk.f32.mxu0 %vm346_vm1, %v2573_v4  ;;  %v2591_v8 = vld [vmem:[%s2570_s13 + $0x18] sm:$0xff]  ;;  %v2594_v9 = vld [vmem:[%s2570_s13 + $0x20] sm:$0xff]  ;;  %v2600_v11 = vld [vmem:[%s2570_s13 + $0x28] sm:$0xff] }
  0x18   : > { %2133 = vmatmul.mubr.msk.f32.vlgmr.msra.gmra.mxu0 %vm346_vm1, %v2576_v5  ;;  %v2605_v12 = vld [vmem:[%s2570_s13 + $0x30] sm:$0xff]  ;;  %v2614_v13 = vld [vmem:[%s2570_s13 + $0x38] sm:$0xff]  ;;  %v2617_v14 = vld [vmem:[%s2570_s13 + $0x40] sm:$0xff] }
  0x19   : > { %2159 = vmatpush3.bf16.msra.mxu1 %v2268_v2  ;;  %2135 = vmatprep.mubr.msk.f32.mxu0 %vm346_vm1, %v2579_v6  ;;  %v2624_v15 = vld [vmem:[%s2570_s13 + $0x48] sm:$0xff]  ;;  %v2627_v16 = vld [vmem:[%s2570_s13 + $0x50] sm:$0xff]  ;;  %v2634_v17 = vld [vmem:[%s2570_s13 + $0x58] sm:$0xff] }
  0x1a   : > { %2160 = vmatprep.subr.bf16.mxu1 %v2269_v3  ;;  %v2637_v18 = vld [vmem:[%s2570_s13 + $0x60] sm:$0xff]  ;;  %v335_v19 = vld [vmem:[%s2570_s13 + $0x68] sm:$0xff]  ;;  %v336_v20 = vld [vmem:[%s2570_s13 + $0x70] sm:$0xff] }
  0x1b   : > { %v337_v21 = vld [vmem:[%s2570_s13 + $0x78] sm:$0xff]  ;;  %v2276_v26 = vld [vmem:[%s3390_s5 + $0x30] sm:$0xff]   ;;  %v2277_v27 = vld [vmem:[%s3390_s5 + $0x28] sm:$0xff]  }
  0x1c   : > { %2136 = vmatmul.mubr.msk.f32.gmra.mxu0 %vm346_vm1, %v2591_v8  ;;  %v2275_v25 = vld [vmem:[%s3390_s5 + $0x38] sm:$0xff]   ;;  %v2278_v28 = vld [vmem:[%s3390_s5 + $0x20] sm:$0xff]  }
  0x1d   : > { %2161 = vmatpush3.bf16.msra.mxu1 %v2269_v3  ;;  %2138 = vmatprep.mubr.msk.f32.mxu0 %vm346_vm1, %v2594_v9  ;;  %v2279_v29 = vld [vmem:[%s3390_s5 + $0x18] sm:$0xff]   ;;  %v1928_v30 = vld [vmem:[%s3387_s2] ss:$0 sm:$0xff] }
  0x1e   : > { %2162 = vmatprep.subr.bf16.mxu1 %v2270_v7  ;;  %2188 = vmatprep.subr.bf16.mxu0 %v2275_v25 }
  0x1f   : > { %2189 = vmatpush3.bf16.msra.mxu0 %v2275_v25 }
  0x20   : > { %2139 = vmatmul.mubr.msk.f32.gmra.mxu0 %vm346_vm1, %v2600_v11  ;;  %2190 = vmatprep.subr.bf16.mxu0 %v2276_v26 }
  0x21   : > { %2163 = vmatpush3.bf16.msra.mxu1 %v2270_v7  ;;  %2141 = vmatprep.mubr.msk.f32.mxu0 %vm346_vm1, %v2605_v12 }
  0x22   : > { %2164 = vmatprep.subr.bf16.mxu1 %v2271_v10 }
  0x23   : > { %2191 = vmatpush3.bf16.msra.mxu0 %v2276_v26 }
  0x24   : > { %2142 = vmatmul.mubr.msk.f32.gmra.mxu0 %vm346_vm1, %v2614_v13  ;;  %2192 = vmatprep.subr.bf16.mxu0 %v2277_v27 }
  0x25   : > { %2165 = vmatpush3.bf16.msra.mxu1 %v2271_v10  ;;  %2144 = vmatprep.mubr.msk.f32.mxu0 %vm346_vm1, %v2617_v14 }
  0x26   : > { %2166 = vmatprep.subr.bf16.mxu1 %v2272_v22 }
  0x27   : > { %2193 = vmatpush3.bf16.msra.mxu0 %v2277_v27 }
  0x28   : > { %2145 = vmatmul.mubr.msk.f32.gmra.mxu0 %vm346_vm1, %v2624_v15  ;;  %2194 = vmatprep.subr.bf16.mxu0 %v2278_v28 }
  0x29   : > { %2147 = vmatprep.mubr.msk.f32.mxu0 %vm346_vm1, %v2627_v16  ;;  %2167 = vmatpush3.bf16.msra.mxu1 %v2272_v22 }
  0x2a   : > { %2168 = vmatprep.subr.bf16.mxu1 %v2273_v23 }
  0x2b   : > { %2195 = vmatpush3.bf16.msra.mxu0 %v2278_v28 }
  0x2c   : > { %2148 = vmatmul.mubr.msk.f32.gmra.mxu0 %vm346_vm1, %v2634_v17  ;;  %2196 = vmatprep.subr.bf16.mxu0 %v2279_v29 }
  0x2d   : > { %2150 = vmatprep.mubr.msk.f32.mxu0 %vm346_vm1, %v2637_v18  ;;  %2169 = vmatpush3.bf16.msra.mxu1 %v2273_v23 }
  0x2e   : > { %2170 = vmatprep.subr.bf16.mxu1 %v2274_v24 }
  0x2f   : > { %2197 = vmatpush3.bf16.msra.mxu0 %v2279_v29 }
  0x30   : > { %2151 = vmatmul.mubr.msk.f32.gmra.mxu0 %vm346_vm1, %v335_v19 }
  0x31   : > { %2153 = vmatprep.mubr.msk.f32.mxu0 %vm346_vm1, %v336_v20  ;;  %2171 = vmatpush3.bf16.msra.mxu1 %v2274_v24 }
  0x34   : > { %2154 = vmatmul.mubr.msk.f32.gmra.mxu0 %vm346_vm1, %v337_v21 }
  0xd8   : > { %v2134_v31 = vpop.f32.mrf.mxu0 }
  0xd9   : > { %v471_v32 = vadd.f32 %v2134_v31, %v1928_v30 }
  0xda   : > { %v465_v33 = vpop.f32.mrf.mxu0 }
  0xdb   : > { %v466_v34 = vadd.f32 %v1928_v30, %v465_v33  ;;  %v545_v36 = vmax.f32 %v471_v32, 0.0 }
  0xdc   : > { %v2137_v35 = vpop.f32.mrf.mxu0 }
  0xdd   : > { %v544_v37 = vmax.f32 %v466_v34, 0.0  ;;  %v481_v38 = vadd.f32 %v2137_v35, %v1928_v30 }
  0xde   : > { %v475_v39 = vpop.f32.mrf.mxu0 }
  0xdf   : > { %v476_v40 = vadd.f32 %v1928_v30, %v475_v39  ;;  %v560_v41 = vpack.c.bf16 %v545_v36, %v544_v37  ;;  %v547_v43 = vmax.f32 %v481_v38, 0.0  ;;  %v2280_v37 = vld [vmem:[%s3390_s5 + $0x10] sm:$0xff]   ;;  %v2281_v38 = vld [vmem:[%s3390_s5 + $0x8] sm:$0xff]  }
  0xe0   : > { %v2140_v42 = vpop.f32.mrf.mxu0  ;;  %2198 = vmatprep.subr.bf16.mxu0 %v2280_v37 }
  0xe1   : > { %v546_v44 = vmax.f32 %v476_v40, 0.0  ;;  %2172 = vmatprep.mubr.bf16.mxu1 %v560_v41  ;;  %v491_v45 = vadd.f32 %v2140_v42, %v1928_v30  ;;  %2199 = vmatpush3.bf16.msra.mxu0 %v2280_v37  ;;  %v2688_v40 = vld [vmem:[%s3389_s4] ss:$0 sm:$0xff] }
  0xe2   : > { %v485_v46 = vpop.f32.mrf.mxu0  ;;  %2200 = vmatprep.subr.bf16.mxu0 %v2281_v38 }
  0xe3   : > { %v561_v47 = vpack.c.bf16 %v547_v43, %v546_v44  ;;  %v549_v48 = vmax.f32 %v491_v45, 0.0  ;;  %v486_v49 = vadd.f32 %v1928_v30, %v485_v46 }
  0xe4   : > { %v2143_v50 = vpop.f32.mrf.mxu0 }
  0xe5   : > { %2173 = vmatmul.mubr.bf16.vlgmr.msra.gmra.mxu1 %v561_v47  ;;  %v548_v51 = vmax.f32 %v486_v49, 0.0  ;;  %v501_v52 = vadd.f32 %v2143_v50, %v1928_v30  ;;  %2201 = vmatpush3.bf16.msra.mxu0 %v2281_v38 }
  0xe6   : > { %v495_v53 = vpop.f32.mrf.mxu0 }
  0xe7   : > { %v562_v54 = vpack.c.bf16 %v549_v48, %v548_v51  ;;  %v551_v55 = vmax.f32 %v501_v52, 0.0  ;;  %v496_v56 = vadd.f32 %v1928_v30, %v495_v53 }
  0xe8   : > { %v2146_v57 = vpop.f32.mrf.mxu0 }
  0xe9   : > { %v550_v58 = vmax.f32 %v496_v56, 0.0  ;;  %2176 = vmatprep.mubr.bf16.mxu1 %v562_v54  ;;  %v511_v59 = vadd.f32 %v2146_v57, %v1928_v30 }
  0xea   : > { %v505_v60 = vpop.f32.mrf.mxu0 }
  0xeb   : > { %v563_v61 = vpack.c.bf16 %v551_v55, %v550_v58  ;;  %v553_v62 = vmax.f32 %v511_v59, 0.0  ;;  %v506_v63 = vadd.f32 %v1928_v30, %v505_v60 }
  0xec   : > { %v2149_v0 = vpop.f32.mrf.mxu0 }
  0xed   : > { %2177 = vmatmul.mubr.bf16.gmra.mxu1 %v563_v61  ;;  %v552_v1 = vmax.f32 %v506_v63, 0.0  ;;  %v521_v2 = vadd.f32 %v2149_v0, %v1928_v30 }
  0xee   : > { %v515_v3 = vpop.f32.mrf.mxu0 }
  0xef   : > { %v564_v7 = vpack.c.bf16 %v553_v62, %v552_v1  ;;  %v555_v10 = vmax.f32 %v521_v2, 0.0  ;;  %v516_v19 = vadd.f32 %v1928_v30, %v515_v3 }
  0xf0   : > { %v2152_v20 = vpop.f32.mrf.mxu0 }
  0xf1   : > { %v554_v21 = vmax.f32 %v516_v19, 0.0  ;;  %2180 = vmatprep.mubr.bf16.mxu1 %v564_v7  ;;  %v531_v22 = vadd.f32 %v2152_v20, %v1928_v30 }
  0xf2   : > { %v525_v23 = vpop.f32.mrf.mxu0 }
  0xf3   : > { %v565_v24 = vpack.c.bf16 %v555_v10, %v554_v21  ;;  %v557_v25 = vmax.f32 %v531_v22, 0.0  ;;  %v526_v26 = vadd.f32 %v1928_v30, %v525_v23 }
  0xf4   : > { %v2155_v27 = vpop.f32.mrf.mxu0 }
  0xf5   : > { %2181 = vmatmul.mubr.bf16.gmra.mxu1 %v565_v24  ;;  %v556_v28 = vmax.f32 %v526_v26, 0.0  ;;  %v541_v29 = vadd.f32 %v2155_v27, %v1928_v30 }
  0xf6   : > { %v535_v31 = vpop.f32.mrf.mxu0 }
  0xf7   : > { %v566_v32 = vpack.c.bf16 %v557_v25, %v556_v28  ;;  %v559_v33 = vmax.f32 %v541_v29, 0.0  ;;  %v536_v34 = vadd.f32 %v1928_v30, %v535_v31  ;;  %v2282_v30 = vld [vmem:[%s3390_s5] sm:$0xff]  }
  0xf8   : > { %2202 = vmatprep.subr.bf16.mxu0 %v2282_v30 }
  0xf9   : > { %v558_v35 = vmax.f32 %v536_v34, 0.0  ;;  %2184 = vmatprep.mubr.bf16.mxu1 %v566_v32  ;;  %2203 = vmatpush3.bf16.msra.mxu0 %v2282_v30 }
  0xfb   : > { %v567_v36 = vpack.c.bf16 %v559_v33, %v558_v35 }
  0xfd   : > { %2185 = vmatmul.mubr.bf16.gmra.mxu1 %v567_v36 }
 0x1a5   : > { %v2174_v39 = vpop.f32.mrf.mxu1 }
 0x1a6   : > { %v682_v42 = vadd.f32 %v2174_v39, %v2688_v40 }
 0x1a7   : > { %v673_v41 = vpop.f32.mrf.mxu1 }
 0x1a8   : > { %v674_v44 = vadd.f32 %v2688_v40, %v673_v41  ;;  %v738_v47 = vmax.f32 %v682_v42, 0.0 }
 0x1a9   : > { %v2175_v43 = vpop.f32.mrf.mxu1 }
 0x1aa   : > { %v685_v45 = vadd.f32 %v2175_v43, %v2688_v40  ;;  %v736_v51 = vmax.f32 %v674_v44, 0.0 }
 0x1ab   : > { %v676_v46 = vpop.f32.mrf.mxu1 }
 0x1ac   : > { %v739_v48 = vmax.f32 %v685_v45, 0.0  ;;  %v677_v49 = vadd.f32 %v2688_v40, %v676_v46  ;;  %v2722_v46 = vld [vmem:[%s3391_s6] ss:$0 sm:$0xff] }
 0x1ad   : > { %v2178_v50 = vpop.f32.mrf.mxu1 }
 0x1ae   : > { %v753_v52 = vpack.c.bf16 %v739_v48, %v738_v47  ;;  %v737_v53 = vmax.f32 %v677_v49, 0.0  ;;  %v698_v54 = vadd.f32 %v2178_v50, %v2688_v40 }
 0x1af   : > { %v689_v55 = vpop.f32.mrf.mxu1 }
 0x1b0   : > { %2074 = vst [vmem:[%s2698_s20 + $0x8] sm:$0xff] %v753_v52   ;;  %v752_v56 = vpack.c.bf16 %v737_v53, %v736_v51  ;;  %v690_v57 = vadd.f32 %v2688_v40, %v689_v55  ;;  %v742_v59 = vmax.f32 %v698_v54, 0.0 }
 0x1b1   : > { %v2179_v58 = vpop.f32.mrf.mxu1 }
 0x1b2   : > { %2038 = vst [vmem:[%s2698_s20] sm:$0xff] %v752_v56   ;;  %2204 = vmatprep.mubr.bf16.mxu0 %v752_v56  ;;  %v701_v60 = vadd.f32 %v2179_v58, %v2688_v40  ;;  %v740_v62 = vmax.f32 %v690_v57, 0.0 }
 0x1b3   : > { %2205 = vmatmul.mubr.bf16.vlgmr.msra.gmra.mxu0 %v753_v52  ;;  %v692_v61 = vpop.f32.mrf.mxu1 }
 0x1b4   : > { %v743_v63 = vmax.f32 %v701_v60, 0.0  ;;  %v693_v0 = vadd.f32 %v2688_v40, %v692_v61 }
 0x1b5   : > { %v2182_v1 = vpop.f32.mrf.mxu1 }
 0x1b6   : > { %v755_v2 = vpack.c.bf16 %v743_v63, %v742_v59  ;;  %v741_v3 = vmax.f32 %v693_v0, 0.0  ;;  %v714_v7 = vadd.f32 %v2182_v1, %v2688_v40 }
 0x1b7   : > { %v705_v10 = vpop.f32.mrf.mxu1 }
 0x1b8   : > { %2076 = vst [vmem:[%s2698_s20 + $0x18] sm:$0xff] %v755_v2   ;;  %v754_v19 = vpack.c.bf16 %v741_v3, %v740_v62  ;;  %v706_v20 = vadd.f32 %v2688_v40, %v705_v10  ;;  %v746_v22 = vmax.f32 %v714_v7, 0.0 }
 0x1b9   : > { %v2183_v21 = vpop.f32.mrf.mxu1 }
 0x1ba   : > { %2075 = vst [vmem:[%s2698_s20 + $0x10] sm:$0xff] %v754_v19   ;;  %2208 = vmatprep.mubr.bf16.mxu0 %v754_v19  ;;  %v717_v23 = vadd.f32 %v2183_v21, %v2688_v40  ;;  %v744_v25 = vmax.f32 %v706_v20, 0.0 }
 0x1bb   : > { %2209 = vmatmul.mubr.bf16.gmra.mxu0 %v755_v2  ;;  %v708_v24 = vpop.f32.mrf.mxu1 }
 0x1bc   : > { %v747_v26 = vmax.f32 %v717_v23, 0.0  ;;  %v709_v27 = vadd.f32 %v2688_v40, %v708_v24 }
 0x1bd   : > { %v2186_v28 = vpop.f32.mrf.mxu1 }
 0x1be   : > { %v757_v29 = vpack.c.bf16 %v747_v26, %v746_v22  ;;  %v745_v31 = vmax.f32 %v709_v27, 0.0  ;;  %v730_v32 = vadd.f32 %v2186_v28, %v2688_v40 }
 0x1bf   : > { %v721_v33 = vpop.f32.mrf.mxu1 }
 0x1c0   : > { %2078 = vst [vmem:[%s2698_s20 + $0x28] sm:$0xff] %v757_v29   ;;  %v756_v34 = vpack.c.bf16 %v745_v31, %v744_v25  ;;  %v722_v35 = vadd.f32 %v2688_v40, %v721_v33  ;;  %v750_v37 = vmax.f32 %v730_v32, 0.0 }
 0x1c1   : > { %v2187_v36 = vpop.f32.mrf.mxu1 }
 0x1c2   : > { %2077 = vst [vmem:[%s2698_s20 + $0x20] sm:$0xff] %v756_v34   ;;  %2212 = vmatprep.mubr.bf16.mxu0 %v756_v34  ;;  %v733_v38 = vadd.f32 %v2187_v36, %v2688_v40  ;;  %v748_v39 = vmax.f32 %v722_v35, 0.0 }
 0x1c3   : > { %2213 = vmatmul.mubr.bf16.gmra.mxu0 %v757_v29  ;;  %v724_v30 = vpop.f32.mrf.mxu1 }
 0x1c4   : > { %v751_v41 = vmax.f32 %v733_v38, 0.0  ;;  %v725_v42 = vadd.f32 %v2688_v40, %v724_v30 }
 0x1c6   : > { %v759_v43 = vpack.c.bf16 %v751_v41, %v750_v37  ;;  %v749_v44 = vmax.f32 %v725_v42, 0.0 }
 0x1c8   : > { %2080 = vst [vmem:[%s2698_s20 + $0x38] sm:$0xff] %v759_v43   ;;  %v758_v45 = vpack.c.bf16 %v749_v44, %v748_v39 }
 0x1ca   : > { %2079 = vst [vmem:[%s2698_s20 + $0x30] sm:$0xff] %v758_v45   ;;  %2216 = vmatprep.mubr.bf16.mxu0 %v758_v45  ;;  %s2453_s20 = smov [#allocation2]  }
 0x1cb   : > { %2217 = vmatmul.mubr.bf16.gmra.mxu0 %v759_v43 }
 0x273   : > { %v2206_v40 = vpop.f32.mrf.mxu0 }
 0x274   : > { %v2732_v47 = vadd.f32 %v2206_v40, %v2722_v46 }
 0x275   : > { %v937_v48 = vpop.f32.mrf.mxu0 }
 0x276   : > { %1002 = vst [vmem:[%s2729_s25 + $0x10] sm:$0xff] %v2732_v47  ;;  %v2737_v49 = vadd.f32 %v2722_v46, %v937_v48  ;;  %1132 = vrot.lane.b32.xlu1 %v2732_v47, %s2447_s19 }
 0x277   : > { %v2207_v50 = vpop.f32.mrf.mxu0 }
 0x278   : > { %1000 = vst [vmem:[%s2729_s25] sm:$0xff] %v2737_v49  ;;  %v2744_v51 = vadd.f32 %v2207_v50, %v2722_v46  ;;  %1128 = vrot.lane.b32.xlu0 %v2737_v49, %s2447_s19 }
 0x279   : > { %v940_v52 = vpop.f32.mrf.mxu0 }
 0x27a   : > { %1003 = vst [vmem:[%s2729_s25 + $0x18] sm:$0xff] %v2744_v51  ;;  %v2751_v53 = vadd.f32 %v2722_v46, %v940_v52  ;;  %1228 = vrot.lane.b32.xlu1 %v2732_v47, %s2448_s26 }
 0x27b   : > { %v2210_v54 = vpop.f32.mrf.mxu0 }
 0x27c   : > { %1001 = vst [vmem:[%s2729_s25 + $0x8] sm:$0xff] %v2751_v53  ;;  %1230 = vrot.lane.b32.xlu0 %v2744_v51, %s2448_s26  ;;  %v2760_v55 = vadd.f32 %v2210_v54, %v2722_v46 }
 0x27d   : > { %v953_v56 = vpop.f32.mrf.mxu0 }
 0x27e   : > { %1375 = vrot.lane.b32.xlu1 %v2732_v47, %s2449_s10  ;;  %1006 = vst [vmem:[%s2729_s25 + $0x30] sm:$0xff] %v2760_v55  ;;  %v2767_v57 = vadd.f32 %v2722_v46, %v953_v56 }
 0x27f   : > { %v2211_v58 = vpop.f32.mrf.mxu0 }
 0x280   : > { %1130 = vrot.lane.b32.xlu0 %v2751_v53, %s2447_s19  ;;  %1004 = vst [vmem:[%s2729_s25 + $0x20] sm:$0xff] %v2767_v57  ;;  %v2774_v59 = vadd.f32 %v2211_v58, %v2722_v46 }
 0x281   : > { %v956_v60 = vpop.f32.mrf.mxu0 }
 0x282   : > { %1224 = vrot.lane.b32.xlu1 %v2737_v49, %s2448_s26  ;;  %1007 = vst [vmem:[%s2729_s25 + $0x38] sm:$0xff] %v2774_v59  ;;  %v2781_v61 = vadd.f32 %v2722_v46, %v956_v60 }
 0x283   : > { %v2214_v62 = vpop.f32.mrf.mxu0 }
 0x284   : > { %1226 = vrot.lane.b32.xlu0 %v2751_v53, %s2448_s26  ;;  %1005 = vst [vmem:[%s2729_s25 + $0x28] sm:$0xff] %v2781_v61  ;;  %v2788_v63 = vadd.f32 %v2214_v62, %v2722_v46 }
 0x285   : > { %v969_v0 = vpop.f32.mrf.mxu0 }
 0x286   : > { %1371 = vrot.lane.b32.xlu1 %v2737_v49, %s2449_s10  ;;  %1010 = vst [vmem:[%s2729_s25 + $0x50] sm:$0xff] %v2788_v63  ;;  %v2795_v1 = vadd.f32 %v2722_v46, %v969_v0 }
 0x287   : > { %v2215_v2 = vpop.f32.mrf.mxu0 }
 0x288   : > { %1373 = vrot.lane.b32.xlu0 %v2751_v53, %s2449_s10  ;;  %v2800_v3 = vadd.f32 %v2215_v2, %v2722_v46  ;;  %1008 = vst [vmem:[%s2729_s25 + $0x40] sm:$0xff] %v2795_v1 }
 0x289   : > { %v972_v7 = vpop.f32.mrf.mxu0 }
 0x28a   : > { %1134 = vrot.lane.b32.xlu1 %v2744_v51, %s2447_s19  ;;  %1011 = vst [vmem:[%s2729_s25 + $0x58] sm:$0xff] %v2800_v3  ;;  %v2809_v10 = vadd.f32 %v2722_v46, %v972_v7 }
 0x28b   : > { %v2218_v19 = vpop.f32.mrf.mxu0 }
 0x28c   : > { %1140 = vrot.lane.b32.xlu0 %v2760_v55, %s2447_s19  ;;  %v994_v20 = vadd.f32 %v2218_v19, %v2722_v46  ;;  %1009 = vst [vmem:[%s2729_s25 + $0x48] sm:$0xff] %v2809_v10 }
 0x28d   : > { %v985_v21 = vpop.f32.mrf.mxu0 }
 0x28e   : > { %1377 = vrot.lane.b32.xlu1 %v2744_v51, %s2449_s10  ;;  %1014 = vst [vmem:[%s2729_s25 + $0x70] sm:$0xff] %v994_v20  ;;  %v2820_v22 = vadd.f32 %v2722_v46, %v985_v21 }
 0x28f   : > { %v2219_v23 = vpop.f32.mrf.mxu0 }
 0x290   : > { %1383 = vrot.lane.b32.xlu0 %v2760_v55, %s2449_s10  ;;  %v997_v24 = vadd.f32 %v2219_v23, %v2722_v46  ;;  %1012 = vst [vmem:[%s2729_s25 + $0x60] sm:$0xff] %v2820_v22 }
 0x291   : > { %v988_v25 = vpop.f32.mrf.mxu0 }
 0x292   : > { %1236 = vrot.lane.b32.xlu1 %v2760_v55, %s2448_s26  ;;  %1015 = vst [vmem:[%s2729_s25 + $0x78] sm:$0xff] %v997_v24  ;;  %v989_v26 = vadd.f32 %v2722_v46, %v988_v25 }
 0x294   : > { %1136 = vrot.lane.b32.xlu0 %v2767_v57, %s2447_s19  ;;  %1013 = vst [vmem:[%s2729_s25 + $0x68] sm:$0xff] %v989_v26 }
 0x296   : > { %1232 = vrot.lane.b32.xlu1 %v2767_v57, %s2448_s26 }
 0x298   : > { %1379 = vrot.lane.b32.xlu0 %v2767_v57, %s2449_s10 }
 0x29a   : > { %1142 = vrot.lane.b32.xlu1 %v2774_v59, %s2447_s19 }
 0x29c   : > { %1238 = vrot.lane.b32.xlu0 %v2774_v59, %s2448_s26 }
 0x29e   : > { %1385 = vrot.lane.b32.xlu1 %v2774_v59, %s2449_s10 }
 0x2a0   : > { %1234 = vrot.lane.b32.xlu0 %v2781_v61, %s2448_s26 }
 0x2a2   : > { %1138 = vrot.lane.b32.xlu1 %v2781_v61, %s2447_s19 }
 0x2a4   : > { %1148 = vrot.lane.b32.xlu0 %v2788_v63, %s2447_s19 }
 0x2a6   : > { %1381 = vrot.lane.b32.xlu1 %v2781_v61, %s2449_s10 }
 0x2a8   : > { %1391 = vrot.lane.b32.xlu0 %v2788_v63, %s2449_s10 }
 0x2aa   : > { %1244 = vrot.lane.b32.xlu1 %v2788_v63, %s2448_s26 }
 0x2ac   : > { %1144 = vrot.lane.b32.xlu0 %v2795_v1, %s2447_s19 }
 0x2ae   : > { %1240 = vrot.lane.b32.xlu1 %v2795_v1, %s2448_s26 }
 0x2b0   : > { %1387 = vrot.lane.b32.xlu0 %v2795_v1, %s2449_s10 }
 0x2b2   : > { %1150 = vrot.lane.b32.xlu1 %v2800_v3, %s2447_s19 }
 0x2b4   : > { %1246 = vrot.lane.b32.xlu0 %v2800_v3, %s2448_s26 }
 0x2b6   : > { %1393 = vrot.lane.b32.xlu1 %v2800_v3, %s2449_s10 }
 0x2b8   : > { %1242 = vrot.lane.b32.xlu0 %v2809_v10, %s2448_s26 }
 0x2ba   : > { %1146 = vrot.lane.b32.xlu1 %v2809_v10, %s2447_s19 }
 0x2bc   : > { %1156 = vrot.lane.b32.xlu0 %v994_v20, %s2447_s19 }
 0x2be   : > { %1389 = vrot.lane.b32.xlu1 %v2809_v10, %s2449_s10 }
 0x2c0   : > { %1399 = vrot.lane.b32.xlu0 %v994_v20, %s2449_s10 }
 0x2c2   : > { %1252 = vrot.lane.b32.xlu1 %v994_v20, %s2448_s26 }
 0x2c4   : > { %1152 = vrot.lane.b32.xlu0 %v2820_v22, %s2447_s19 }
 0x2c6   : > { %1248 = vrot.lane.b32.xlu1 %v2820_v22, %s2448_s26 }
 0x2c8   : > { %1395 = vrot.lane.b32.xlu0 %v2820_v22, %s2449_s10 }
 0x2ca   : > { %1158 = vrot.lane.b32.xlu1 %v997_v24, %s2447_s19 }
 0x2cc   : > { %1254 = vrot.lane.b32.xlu0 %v997_v24, %s2448_s26 }
 0x2ce   : > { %1401 = vrot.lane.b32.xlu1 %v997_v24, %s2449_s10 }
 0x2d0   : > { %1250 = vrot.lane.b32.xlu0 %v989_v26, %s2448_s26  ;;  %s2389_s26 = sshll.u32 %s2453_s20, 4  ;;  %s2390_s26 = int_to_ptr.vmem [resolvable:$false] %s2389_s26 }
 0x2d1   : > { %p2392_p0 = scmp.lt.s32.totalorder %s3300_s21, %s2390_s26 }
 0x2d2   : > { %1154 = vrot.lane.b32.xlu1 %v989_v26, %s2447_s19  ;;  %s3305_s19 = scalar_lea.sflag [#allocation3], %s298_s17 }
 0x2d6   : > { %1397 = vrot.lane.b32.xlu1 %v989_v26, %s2449_s10  ;;  %s2391_s10 = scalar_lea.vmem %s2390_s26, 2048 }
 0x2e8   : > { %v1133_v27 = vpop.permute.xlu1 %1132 }
 0x2e9   : > { %v1178_v28 = vadd.f32 %v1133_v27, %v2579_v6  ;;  %v1982_v27 = vmul.f32 -1.442695, %v2732_v47 }
 0x2ea   : > { %v1129_v29 = vpop.permute.xlu0 %1128 }
 0x2eb   : > { %1599 = vrot.lane.b32.xlu1 %v1178_v28, %s2450_s12  ;;  %v1176_v32 = vadd.f32 %v1129_v29, %v2573_v4  ;;  %2283 = vpow2.f32 %v1982_v27 }
 0x2ec   : > { %v1229_v31 = vpop.permute.xlu1 %1228 }
 0x2ed   : > { %v1279_v33 = vsel %vm1272_vm2, %v1229_v31, -inf }
 0x2ee   : > { %v1231_v35 = vpop.permute.xlu0 %1230 }
 0x2ef   : > { %1280 = vmax.index.xlane.f32.xlu0 %v1279_v33  ;;  %1595 = vrot.lane.b32.xlu1 %v1176_v32, %s2450_s12  ;;  %v1282_v30 = vsel %vm1272_vm2, %v1231_v35, -inf  ;;  %v1980_v33 = vmul.f32 -1.442695, %v2737_v49 }
 0x2f0   : > { %v2894_v34 = vpop.permute.xlu1 %1375 }
 0x2f1   : > { %2285 = vpow2.f32 %v1980_v33 }
 0x2f2   : > { %v1131_v6 = vpop.permute.xlu0 %1130 }
 0x2f3   : > { %v1177_v50 = vadd.f32 %v1131_v6, %v2576_v5 }
 0x2f4   : > { %v1225_v36 = vpop.permute.xlu1 %1224 }
 0x2f5   : > { %v1273_v37 = vsel %vm1272_vm2, %v1225_v36, -inf }
 0x2f6   : > { %1274 = vmax.index.xlane.f32.xlu0 %v1273_v37  ;;  %v1227_v4 = vpop.permute.xlu0 %1226 }
 0x2f7   : > { %v1276_v5 = vsel %vm1272_vm2, %v1227_v4, -inf  ;;  %v1983_v4 = vmul.f32 -1.442695, %v2744_v51 }
 0x2f8   : > { %v2897_v38 = vpop.permute.xlu1 %1371 }
 0x2fa   : > { %1283 = vmax.index.xlane.f32.xlu0 %v1282_v30  ;;  %v2904_v43 = vpop.permute.xlu0 %1373  ;;  %v2284_v30 = vpop.eup %2283 }
 0x2fc   : > { %v1135_v39 = vpop.permute.xlu1 %1134 }
 0x2fd   : > { %v1179_v41 = vadd.f32 %v1135_v39, %v2591_v8  ;;  %v1196_v39 = vmul.f32 1.442695, %v2732_v47 }
 0x2fe   : > { %v1141_v45 = vpop.permute.xlu0 %1140 }
 0x2ff   : > { %1601 = vrot.lane.b32.xlu1 %v1179_v41, %s2450_s12  ;;  %v1182_v52 = vadd.f32 %v1141_v45, %v2605_v12  ;;  %v1066_v41 = vadd.f32 1.0, %v2284_v30  ;;  %2287 = vpow2.f32 %v1196_v39  ;;  %v1981_v39 = vmul.f32 -1.442695, %v2751_v53 }
 0x300   : > { %v2902_v42 = vpop.permute.xlu1 %1377  ;;  %2289 = vpow2.f32 %v1983_v4 }
 0x301   : > { %2291 = vrcp.f32 %v1066_v41 }
 0x302   : > { %v2906_v48 = vpop.permute.xlu0 %1383 }
 0x304   : > { %v1237_v44 = vpop.permute.xlu1 %1236 }
 0x306   : > { %v1137_v8 = vpop.permute.xlu0 %1136 }
 0x307   : > { %v1180_v56 = vadd.f32 %v1137_v8, %v2594_v9  ;;  %v1291_v9 = vsel %vm1272_vm2, %v1237_v44, -inf  ;;  %v2286_v44 = vpop.eup %2285 }
 0x308   : > { %v1233_v46 = vpop.permute.xlu1 %1232 }
 0x309   : > { %v1285_v20 = vsel %vm1272_vm2, %v1233_v46, -inf }
 0x30a   : > { %v2923_v12 = vpop.permute.xlu0 %1379 }
 0x30c   : > { %v1143_v40 = vpop.permute.xlu1 %1142 }
 0x30d   : > { %v1183_v28 = vadd.f32 %v1143_v40, %v2614_v13 }
 0x30e   : > { %v1239_v7 = vpop.permute.xlu0 %1238 }
 0x30f   : > { %v1294_v26 = vsel %vm1272_vm2, %v1239_v7, -inf }
 0x310   : > { %v2910_v54 = vpop.permute.xlu1 %1385  ;;  %1597 = vrot.lane.b32.xlu0 %v1177_v50, %s2450_s12  ;;  %v1064_v50 = vadd.f32 1.0, %v2286_v44 }
 0x312   : > { %v1235_v21 = vpop.permute.xlu0 %1234 }
 0x313   : > { %v1288_v29 = vsel %vm1272_vm2, %v1235_v21, -inf }
 0x314   : > { %v1139_v58 = vpop.permute.xlu1 %1138  ;;  %1607 = vrot.lane.b32.xlu0 %v1182_v52, %s2450_s12 }
 0x315   : > { %v1181_v35 = vadd.f32 %v1139_v58, %v2600_v11  ;;  %v1192_v11 = vmul.f32 1.442695, %v2737_v49  ;;  %v2288_v58 = vpop.eup %2287 }
 0x316   : > { %v1149_v24 = vpop.permute.xlu0 %1148  ;;  %v1533_v7 = vmul.f32 3.9, %v2288_v58 }
 0x317   : > { %v1186_v40 = vadd.f32 %v1149_v24, %v2627_v16  ;;  %2293 = vpow2.f32 %v1192_v11  ;;  %v2290_v16 = vpop.eup %2289  ;;  %v1549_v24 = vmul.f32 1.6, %v2288_v58 }
 0x318   : > { %v2915_v60 = vpop.permute.xlu1 %1381  ;;  %1603 = vrot.lane.b32.xlu0 %v1180_v56, %s2450_s12  ;;  %2295 = vrcp.f32 %v1064_v50 }
 0x31a   : > { %v2939_v31 = vpop.permute.xlu0 %1391 }
 0x31c   : > { %v2918_v62 = vpop.permute.xlu1 %1244 }
 0x31d   : > { %v1303_v11 = vsel %vm1272_vm2, %v2918_v62, -inf  ;;  %v1984_v62 = vmul.f32 -1.442695, %v2767_v57 }
 0x31e   : > { %v1145_v36 = vpop.permute.xlu0 %1144 }
 0x31f   : > { %v1184_v47 = vadd.f32 %v1145_v36, %v2617_v14 }
 0x320   : > { %v2920_v0 = vpop.permute.xlu1 %1240 }
 0x322   : > { %v2949_v13 = vpop.permute.xlu0 %1387 }
 0x323   : > { %1277 = vmax.index.xlane.f32.xlu1 %v1276_v5  ;;  %v2292_v5 = vpop.eup %2291 }
 0x324   : > { %v2925_v2 = vpop.permute.xlu1 %1150 }
 0x326   : > { %v2956_v45 = vpop.permute.xlu0 %1246 }
 0x327   : > { %1292 = vmax.index.xlane.f32.xlu1 %v1291_v9  ;;  %v1198_v9 = vmul.f32 1.442695, %v2744_v51 }
 0x328   : > { %v2928_v19 = vpop.permute.xlu1 %1393 }
 0x329   : > { %2297 = vpow2.f32 %v1198_v9 }
 0x32a   : > { %v2963_v52 = vpop.permute.xlu0 %1242 }
 0x32b   : > { %1286 = vmax.index.xlane.f32.xlu1 %v1285_v20  ;;  %v2294_v20 = vpop.eup %2293 }
 0x32c   : > { %v2931_v23 = vpop.permute.xlu1 %1146  ;;  %v1531_v51 = vmul.f32 3.9, %v2294_v20  ;;  %v1547_v4 = vmul.f32 1.6, %v2294_v20 }
 0x32e   : > { %v2968_v49 = vpop.permute.xlu0 %1156 }
 0x330   : > { %v2933_v25 = vpop.permute.xlu1 %1389 }
 0x334   : > { %v2941_v32 = vpop.permute.xlu1 %1252 }
 0x337   : > { %1295 = vmax.index.xlane.f32.xlu0 %v1294_v26  ;;  %v2974_v26 = vpop.permute.xlu0 %1399 }
 0x338   : > { %v2947_v37 = vpop.permute.xlu1 %1248 }
 0x33b   : > { %1289 = vmax.index.xlane.f32.xlu0 %v1288_v29  ;;  %v1067_v29 = vadd.f32 1.0, %v2290_v16  ;;  %v1986_v16 = vmul.f32 -1.442695, %v2760_v55 }
 0x33c   : > { %1609 = vrot.lane.b32.xlu1 %v1183_v28, %s2450_s12  ;;  %v2951_v6 = vpop.permute.xlu1 %1158  ;;  %v1565_v28 = vmul.f32 1.56, %v2288_v58 }
 0x33d   : > { %2299 = vrcp.f32 %v1067_v29 }
 0x33e   : > { %2301 = vpow2.f32 %v1981_v39 }
 0x33f   : > { %2303 = vpow2.f32 %v1986_v16  ;;  %v1200_v16 = vmul.f32 1.442695, %v2767_v57 }
 0x340   : > { %1605 = vrot.lane.b32.xlu1 %v1181_v35, %s2450_s12  ;;  %v2958_v46 = vpop.permute.xlu1 %1401  ;;  %v2296_v35 = vpop.eup %2295  ;;  %2305 = vpow2.f32 %v1984_v62 }
 0x344   : > { %v2965_v8 = vpop.permute.xlu1 %1154 }
 0x348   : > { %v2970_v56 = vpop.permute.xlu1 %1397 }
 0x351   : > { %1615 = vrot.lane.b32.xlu0 %v1186_v40, %s2450_s12  ;;  %v1563_v40 = vmul.f32 1.56, %v2294_v20 }
 0x355   : > { %1611 = vrot.lane.b32.xlu0 %v1184_v47, %s2450_s12  ;;  %v2987_v47 = vpop.permute.xlu0 %1152 }
 0x359   : > { %v2996_v9 = vpop.permute.xlu0 %1395 }
 0x35d   : > { %v1600_v14 = vpop.permute.xlu1 %1599  ;;  %v1255_v20 = vpop.permute.xlu0 %1254 }
 0x35e   : > { %v1646_v21 = vsel %vm1643_vm3, %v2292_v5, %v1600_v14  ;;  %v1297_v5 = vsel %vm1272_vm2, %v2920_v0, -inf }
 0x35f   : > { %v1663_v27 = vsel %vm1660_vm4, %v1646_v21, %v1533_v7  ;;  %v2298_v7 = vpop.eup %2297 }
 0x360   : > { %v1680_v33 = vsel %vm1677_vm5, %v1663_v27, %v1549_v24  ;;  %v2300_v14 = vpop.eup %2299  ;;  %v1534_v21 = vmul.f32 3.9, %v2298_v7 }
 0x361   : > { %v1596_v36 = vpop.permute.xlu1 %1595  ;;  %v2979_v30 = vsel %vm1694_vm6, %v1680_v33, %v1565_v28  ;;  %v1550_v28 = vmul.f32 1.6, %v2298_v7  ;;  %v2302_v29 = vpop.eup %2301  ;;  %v1194_v33 = vmul.f32 1.442695, %v2751_v53  ;;  %v1187_v53 = vadd.f32 %v2925_v2, %v2634_v17 }
 0x362   : > { %v1644_v41 = vsel %vm1643_vm3, %v2296_v35, %v1596_v36  ;;  %v1306_v35 = vsel %vm1272_vm2, %v2956_v45, -inf  ;;  %v1566_v36 = vmul.f32 1.56, %v2298_v7  ;;  %v1318_v17 = vsel %vm1272_vm2, %v1255_v20, -inf }
 0x363   : > { %v1661_v44 = vsel %vm1660_vm4, %v1644_v41, %v1531_v51  ;;  %v2304_v41 = vpop.eup %2303  ;;  %2307 = vpow2.f32 %v1194_v33 }
 0x364   : > { %v1678_v50 = vsel %vm1677_vm5, %v1661_v44, %v1547_v4  ;;  %1304 = vmax.index.xlane.f32.xlu1 %v1303_v11  ;;  %v1065_v4 = vadd.f32 1.0, %v2302_v29  ;;  %v1204_v44 = vmul.f32 1.442695, %v2760_v55  ;;  %v1251_v11 = vpop.permute.xlu0 %1250  ;;  %v1070_v45 = vadd.f32 1.0, %v2304_v41 }
 0x365   : > { %v2990_v58 = vsel %vm1694_vm6, %v1678_v50, %v1563_v40  ;;  %v1300_v40 = vsel %vm1272_vm2, %v2963_v52, -inf  ;;  %v2306_v50 = vpop.eup %2305  ;;  %v1312_v62 = vsel %vm1272_vm2, %v1251_v11, -inf }
 0x366   : > { %2309 = vrcp.f32 %v1065_v4  ;;  %v1068_v2 = vadd.f32 1.0, %v2306_v50 }
 0x367   : > { %2311 = vpow2.f32 %v1204_v44 }
 0x368   : > { %1298 = vmax.index.xlane.f32.xlu1 %v1297_v5  ;;  %v1185_v5 = vadd.f32 %v2931_v23, %v2624_v15  ;;  %2313 = vrcp.f32 %v1070_v45 }
 0x369   : > { %2315 = vpow2.f32 %v1200_v16 }
 0x36a   : > { %2317 = vrcp.f32 %v1068_v2 }
 0x370   : > { %v2308_v7 = vpop.eup %2307 }
 0x371   : > { %v1602_v24 = vpop.permute.xlu1 %1601  ;;  %v1532_v23 = vmul.f32 3.9, %v2308_v7  ;;  %v1548_v20 = vmul.f32 1.6, %v2308_v7 }
 0x372   : > { %v1647_v27 = vsel %vm1643_vm3, %v2300_v14, %v1602_v24 }
 0x373   : > { %v1664_v0 = vsel %vm1660_vm4, %v1647_v27, %v1534_v21  ;;  %v2310_v15 = vpop.eup %2309 }
 0x374   : > { %1307 = vmax.index.xlane.f32.xlu0 %v1306_v35  ;;  %v1681_v51 = vsel %vm1677_vm5, %v1664_v0, %v1550_v28  ;;  %v2312_v21 = vpop.eup %2311  ;;  %v1564_v28 = vmul.f32 1.56, %v2308_v7 }
 0x375   : > { %v3005_v39 = vsel %vm1694_vm6, %v1681_v51, %v1566_v36  ;;  %v2314_v33 = vpop.eup %2313  ;;  %v1537_v0 = vmul.f32 3.9, %v2312_v21  ;;  %v1553_v4 = vmul.f32 1.6, %v2312_v21 }
 0x376   : > { %v2316_v51 = vpop.eup %2315 }
 0x377   : > { %v1535_v45 = vmul.f32 3.9, %v2316_v51 }
 0x378   : > { %1301 = vmax.index.xlane.f32.xlu0 %v1300_v40  ;;  %v3016_v55 = vpop.xlane.xlu0 %1280  ;;  %v2318_v40 = vpop.eup %2317 }
 0x379   : > { %1617 = vrot.lane.b32.xlu1 %v1187_v53, %s2450_s12  ;;  %v1569_v53 = vmul.f32 1.56, %v2312_v21  ;;  %v1985_v21 = vmul.f32 -1.442695, %v2781_v61 }
 0x37c   : > { %1319 = vmax.index.xlane.f32.xlu0 %v1318_v17 }
 0x37d   : > { %1613 = vrot.lane.b32.xlu1 %v1185_v5, %s2450_s12  ;;  %v1551_v5 = vmul.f32 1.6, %v2316_v51 }
 0x37f   : > { %v3020_v52 = vpop.xlane.xlu0 %1274 }
 0x380   : > { %1313 = vmax.index.xlane.f32.xlu0 %v1312_v62  ;;  %v1567_v62 = vmul.f32 1.56, %v2316_v51  ;;  %v2451_v51 = vmov 0.0  }
 0x383   : > { %v3023_v57 = vpop.xlane.xlu0 %1283 }
 0x387   : > { %v1598_v14 = vpop.permute.xlu0 %1597 }
 0x388   : > { %v1645_v24 = vsel %vm1643_vm3, %v2310_v15, %v1598_v14  ;;  %v1987_v15 = vmul.f32 -1.442695, %v2774_v59  ;;  %v1188_v14 = vadd.f32 %v2987_v47, %v2637_v18  ;;  %v1988_v18 = vmul.f32 -1.442695, %v2795_v1 }
 0x389   : > { %v1662_v27 = vsel %vm1660_vm4, %v1645_v24, %v1532_v23  ;;  %v1321_v24 = vlaneseq }
 0x38a   : > { %v1679_v29 = vsel %vm1677_vm5, %v1662_v27, %v1548_v20  ;;  %2319 = vpow2.f32 %v1987_v15  ;;  %v1315_v20 = vsel %vm1272_vm2, %v2941_v32, -inf  ;;  %v1990_v27 = vmul.f32 -1.442695, %v2788_v63 }
 0x38b   : > { %v1608_v35 = vpop.permute.xlu0 %1607  ;;  %v3029_v36 = vsel %vm1694_vm6, %v1679_v29, %v1564_v28  ;;  %2321 = vpow2.f32 %v1985_v21  ;;  %v1206_v29 = vmul.f32 1.442695, %v2774_v59  ;;  %v3055_v47 = vand.u32 127, %v1321_v24 }
 0x38c   : > { %v1650_v41 = vsel %vm1643_vm3, %v2314_v33, %v1608_v35  ;;  %v1309_v33 = vsel %vm1272_vm2, %v2947_v37, -inf  ;;  %2323 = vpow2.f32 %v1990_v27  ;;  %v1202_v32 = vmul.f32 1.442695, %v2781_v61 }
 0x38d   : > { %v1667_v44 = vsel %vm1660_vm4, %v1650_v41, %v1537_v0  ;;  %2325 = vpow2.f32 %v1206_v29  ;;  %vm1325_vm7 = vcmp.eq.s32.totalorder %v3055_v47, %v3016_v55  ;;  %vm1323_vm8 = vcmp.eq.s32.totalorder %v3055_v47, %v3020_v52 }
 0x38e   : > { %v1684_v11 = vsel %vm1677_vm5, %v1667_v44, %v1553_v4  ;;  %2327 = vpow2.f32 %v1988_v18  ;;  %v1998_v4 = vsel %vm1325_vm7, 1.0, %v2451_v51  ;;  %v1996_v44 = vsel %vm1323_vm8, 1.0, %v2451_v51 }
 0x38f   : > { %v1604_v50 = vpop.permute.xlu0 %1603  ;;  %v3035_v16 = vsel %vm1694_vm6, %v1684_v11, %v1569_v53  ;;  %v1421_v61 = vmul.f32 %v1998_v4, %v2894_v34  ;;  %vm1326_vm9 = vcmp.eq.s32.totalorder %v3055_v47, %v3023_v57  ;;  %v1212_v11 = vmul.f32 1.442695, %v2788_v63 }
 0x390   : > { %v1648_v17 = vsel %vm1643_vm3, %v2318_v40, %v1604_v50  ;;  %v2379_v40 = vld [vmem:[%s2570_s13 + $0x68] sm:$0xff]  ;;  %v1999_v34 = vsel %vm1326_vm9, 1.0, %v2451_v51  ;;  %v1208_v15 = vmul.f32 1.442695, %v2795_v1 }
 0x391   : > { %v1665_v2 = vsel %vm1660_vm4, %v1648_v17, %v1535_v45  ;;  %v1189_v45 = vadd.f32 %v2379_v40, %v2965_v8  ;;  %v1419_v17 = vmul.f32 %v1996_v44, %v2897_v38 }
 0x392   : > { %v1682_v7 = vsel %vm1677_vm5, %v1665_v2, %v1551_v5  ;;  %v1441_v5 = vsel %vm1272_vm2, %v1421_v61, 0.0 }
 0x393   : > { %v3042_v23 = vsel %vm1694_vm6, %v1682_v7, %v1567_v62  ;;  %v1435_v21 = vsel %vm1272_vm2, %v1419_v17, 0.0 }
 0x396   : > { %1619 = vrot.lane.b32.xlu0 %v1188_v14, %s2450_s12 }
 0x397   : > { %v2320_v28 = vpop.eup %2319 }
 0x398   : > { %v1071_v0 = vadd.f32 1.0, %v2320_v28  ;;  %v2322_v35 = vpop.eup %2321 }
 0x399   : > { %v1069_v59 = vadd.f32 1.0, %v2322_v35  ;;  %v2324_v53 = vpop.eup %2323 }
 0x39a   : > { %2329 = vrcp.f32 %v1071_v0  ;;  %v2326_v2 = vpop.eup %2325  ;;  %v1074_v7 = vadd.f32 1.0, %v2324_v53 }
 0x39b   : > { %2331 = vpow2.f32 %v1202_v32  ;;  %v2328_v62 = vpop.eup %2327  ;;  %v1538_v14 = vmul.f32 3.9, %v2326_v2  ;;  %v1554_v38 = vmul.f32 1.6, %v2326_v2  ;;  %v1570_v29 = vmul.f32 1.56, %v2326_v2 }
 0x39c   : > { %2333 = vrcp.f32 %v1069_v59 }
 0x39d   : > { %2335 = vpow2.f32 %v1212_v11 }
 0x39e   : > { %2337 = vrcp.f32 %v1074_v7 }
 0x39f   : > { %2339 = vpow2.f32 %v1208_v15 }
 0x3a1   : > { %1316 = vmax.index.xlane.f32.xlu1 %v1315_v20  ;;  %v1422_v20 = vmul.f32 %v1999_v34, %v2902_v42 }
 0x3a3   : > { %v1444_v32 = vsel %vm1272_vm2, %v1422_v20, 0.0 }
 0x3a5   : > { %1310 = vmax.index.xlane.f32.xlu1 %v1309_v33  ;;  %v1072_v33 = vadd.f32 1.0, %v2328_v62 }
 0x3a7   : > { %v2330_v63 = vpop.eup %2329  ;;  %2341 = vrcp.f32 %v1072_v33 }
 0x3a8   : > { %v2332_v24 = vpop.eup %2331 }
 0x3a9   : > { %v2334_v18 = vpop.eup %2333  ;;  %v1536_v0 = vmul.f32 3.9, %v2332_v24  ;;  %v1552_v59 = vmul.f32 1.6, %v2332_v24  ;;  %v1568_v44 = vmul.f32 1.56, %v2332_v24 }
 0x3aa   : > { %v2336_v2 = vpop.eup %2335 }
 0x3ab   : > { %v2338_v15 = vpop.eup %2337 }
 0x3ac   : > { %v3060_v37 = vpop.xlane.xlu1 %1277 }
 0x3ad   : > { %vm1324_vm12 = vcmp.eq.s32.totalorder %v3055_v47, %v3060_v37 }
 0x3b0   : > { %v3065_v41 = vpop.xlane.xlu1 %1292 }
 0x3b1   : > { %vm1329_vm13 = vcmp.eq.s32.totalorder %v3055_v47, %v3065_v41 }
 0x3b4   : > { %v3074_v50 = vpop.xlane.xlu1 %1286 }
 0x3b5   : > { %1442 = vadd.xlane.f32.xlu0 %v1441_v5  ;;  %vm1327_vm14 = vcmp.eq.s32.totalorder %v3055_v47, %v3074_v50 }
 0x3b6   : > { %1621 = vrot.lane.b32.xlu1 %v1189_v45, %s2450_s12 }
 0x3b8   : > { %v1610_v8 = vpop.permute.xlu1 %1609 }
 0x3b9   : > { %v1651_v27 = vsel %vm1643_vm3, %v2330_v63, %v1610_v8  ;;  %1436 = vadd.xlane.f32.xlu0 %v1435_v21  ;;  %v1541_v63 = vmul.f32 3.9, %v2336_v2  ;;  %v2340_v8 = vpop.eup %2339  ;;  %v1557_v21 = vmul.f32 1.6, %v2336_v2 }
 0x3ba   : > { %v1668_v28 = vsel %vm1660_vm4, %v1651_v27, %v1538_v14 }
 0x3bb   : > { %v1685_v1 = vsel %vm1677_vm5, %v1668_v28, %v1554_v38  ;;  %v1573_v38 = vmul.f32 1.56, %v2336_v2  ;;  %v2342_v28 = vpop.eup %2341 }
 0x3bc   : > { %v1606_v35 = vpop.permute.xlu1 %1605  ;;  %v3088_v42 = vsel %vm1694_vm6, %v1685_v1, %v1570_v29  ;;  %v1539_v29 = vmul.f32 3.9, %v2340_v8  ;;  %v1555_v1 = vmul.f32 1.6, %v2340_v8 }
 0x3bd   : > { %v1649_v4 = vsel %vm1643_vm3, %v2334_v18, %v1606_v35  ;;  %1445 = vadd.xlane.f32.xlu0 %v1444_v32  ;;  %v1571_v35 = vmul.f32 1.56, %v2340_v8 }
 0x3be   : > { %v1666_v61 = vsel %vm1660_vm4, %v1649_v4, %v1536_v0 }
 0x3bf   : > { %v1683_v53 = vsel %vm1677_vm5, %v1666_v61, %v1552_v59  ;;  %v1991_v59 = vmul.f32 -1.442695, %v2800_v3  ;;  %v1997_v61 = vsel %vm1324_vm12, 1.0, %v2451_v51  ;;  %vm1711_vm12 = vcmask 72704  }
 0x3c0   : > { %v3093_v11 = vpop.xlane.xlu0 %1295  ;;  %v3096_v40 = vsel %vm1694_vm6, %v1683_v53, %v1568_v44  ;;  %v1989_v44 = vmul.f32 -1.442695, %v2809_v10  ;;  %v1420_v53 = vmul.f32 %v1997_v61, %v2904_v43  ;;  %v1214_v43 = vmul.f32 1.442695, %v2800_v3 }
 0x3c1   : > { %vm1330_vm10 = vcmp.eq.s32.totalorder %v3055_v47, %v3093_v11  ;;  %2343 = vpow2.f32 %v1991_v59 }
 0x3c2   : > { %v2003_v45 = vsel %vm1330_vm10, 1.0, %v2451_v51  ;;  %2345 = vpow2.f32 %v1989_v44 }
 0x3c3   : > { %v1426_v5 = vmul.f32 %v2003_v45, %v2910_v54  ;;  %v2002_v45 = vsel %vm1329_vm13, 1.0, %v2451_v51  ;;  %2347 = vpow2.f32 %v1214_v43 }
 0x3c4   : > { %v3102_v17 = vpop.xlane.xlu0 %1289  ;;  %v1425_v2 = vmul.f32 %v2002_v45, %v2906_v48  ;;  %v1992_v48 = vmul.f32 -1.442695, %v2820_v22  ;;  %v1216_v45 = vmul.f32 1.442695, %v2820_v22 }
 0x3c5   : > { %vm1328_vm11 = vcmp.eq.s32.totalorder %v3055_v47, %v3102_v17  ;;  %v1456_v34 = vsel %vm1272_vm2, %v1426_v5, 0.0  ;;  %v1438_v5 = vsel %vm1272_vm2, %v1420_v53, 0.0 }
 0x3c6   : > { %v2001_v62 = vsel %vm1328_vm11, 1.0, %v2451_v51  ;;  %1457 = vadd.xlane.f32.xlu0 %v1456_v34  ;;  %v2000_v34 = vsel %vm1327_vm14, 1.0, %v2451_v51 }
 0x3c7   : > { %v1424_v7 = vmul.f32 %v2001_v62, %v2915_v60  ;;  %v1453_v62 = vsel %vm1272_vm2, %v1425_v2, 0.0 }
 0x3c8   : > { %v1616_v14 = vpop.permute.xlu0 %1615 }
 0x3c9   : > { %v1654_v54 = vsel %vm1643_vm3, %v2338_v15, %v1616_v14  ;;  %v1450_v20 = vsel %vm1272_vm2, %v1424_v7, 0.0  ;;  %v1423_v7 = vmul.f32 %v2000_v34, %v2923_v12 }
 0x3ca   : > { %v1671_v24 = vsel %vm1660_vm4, %v1654_v54, %v1541_v63  ;;  %1451 = vadd.xlane.f32.xlu0 %v1450_v20 }
 0x3cb   : > { %v1688_v27 = vsel %vm1677_vm5, %v1671_v24, %v1557_v21  ;;  %v1447_v63 = vsel %vm1272_vm2, %v1423_v7, 0.0  ;;  %v1210_v21 = vmul.f32 1.442695, %v2809_v10 }
 0x3cc   : > { %v1612_v33 = vpop.permute.xlu0 %1611  ;;  %v3114_v60 = vsel %vm1694_vm6, %v1688_v27, %v1573_v38 }
 0x3cd   : > { %v1652_v18 = vsel %vm1643_vm3, %v2342_v28, %v1612_v33 }
 0x3ce   : > { %v1669_v0 = vsel %vm1660_vm4, %v1652_v18, %v1539_v29  ;;  %v2344_v15 = vpop.eup %2343 }
 0x3cf   : > { %v1686_v32 = vsel %vm1677_vm5, %v1669_v0, %v1555_v1  ;;  %v1075_v14 = vadd.f32 1.0, %v2344_v15  ;;  %v2346_v8 = vpop.eup %2345 }
 0x3d0   : > { %v3123_v4 = vsel %vm1694_vm6, %v1686_v32, %v1571_v35  ;;  %v1073_v54 = vadd.f32 1.0, %v2346_v8  ;;  %v2348_v38 = vpop.eup %2347 }
 0x3d1   : > { %2349 = vrcp.f32 %v1075_v14  ;;  %v1542_v33 = vmul.f32 3.9, %v2348_v38  ;;  %v1558_v0 = vmul.f32 1.6, %v2348_v38  ;;  %v1574_v59 = vmul.f32 1.56, %v2348_v38 }
 0x3d2   : > { %2351 = vpow2.f32 %v1210_v21 }
 0x3d3   : > { %2353 = vpow2.f32 %v1992_v48 }
 0x3d4   : > { %2355 = vrcp.f32 %v1073_v54 }
 0x3d5   : > { %2357 = vpow2.f32 %v1216_v45  ;;  %v2380_v45 = vld [vmem:[%s2570_s13 + $0x70] sm:$0xff] }
 0x3da   : > { %1439 = vadd.xlane.f32.xlu1 %v1438_v5 }
 0x3de   : > { %1454 = vadd.xlane.f32.xlu1 %v1453_v62  ;;  %v2350_v29 = vpop.eup %2349 }
 0x3df   : > { %v2352_v18 = vpop.eup %2351 }
 0x3e0   : > { %v2354_v61 = vpop.eup %2353  ;;  %v1556_v34 = vmul.f32 1.6, %v2352_v18  ;;  %v1572_v15 = vmul.f32 1.56, %v2352_v18 }
 0x3e1   : > { %v2356_v53 = vpop.eup %2355  ;;  %v1076_v43 = vadd.f32 1.0, %v2354_v61 }
 0x3e2   : > { %1448 = vadd.xlane.f32.xlu1 %v1447_v63 }
 0x3e3   : > { %2359 = vrcp.f32 %v1076_v43 }
 0x3ed   : > { %v3142_v12 = vpop.xlane.xlu1 %1304 }
 0x3ee   : > { %vm1333_vm15 = vcmp.eq.s32.totalorder %v3055_v47, %v3142_v12 }
 0x3ef   : > { %v2006_v3 = vsel %vm1333_vm15, 1.0, %v2451_v51 }
 0x3f0   : > { %v1429_v20 = vmul.f32 %v2006_v3, %v2939_v31 }
 0x3f1   : > { %v3148_v24 = vpop.xlane.xlu1 %1298 }
 0x3f2   : > { %vm1331_vm0 = vcmp.eq.s32.totalorder %v3055_v47, %v3148_v24  ;;  %v1465_v10 = vsel %vm1272_vm2, %v1429_v20, 0.0 }
 0x3f3   : > { %v2004_v27 = vsel %vm1331_vm0, 1.0, %v2451_v51  ;;  %1466 = vadd.xlane.f32.xlu1 %v1465_v10 }
 0x3f4   : > { %v1427_v28 = vmul.f32 %v2004_v27, %v2949_v13  ;;  %v1540_v13 = vmul.f32 3.9, %v2352_v18 }
 0x3f5   : > { %v1618_v1 = vpop.permute.xlu1 %1617 }
 0x3f6   : > { %v1655_v31 = vsel %vm1643_vm3, %v2350_v29, %v1618_v1  ;;  %v1459_v35 = vsel %vm1272_vm2, %v1427_v28, 0.0  ;;  %v2358_v29 = vpop.eup %2357 }
 0x3f7   : > { %v1672_v32 = vsel %vm1660_vm4, %v1655_v31, %v1542_v33  ;;  %1460 = vadd.xlane.f32.xlu1 %v1459_v35  ;;  %v2360_v18 = vpop.eup %2359  ;;  %v1559_v35 = vmul.f32 1.6, %v2358_v29  ;;  %v1575_v61 = vmul.f32 1.56, %v2358_v29 }
 0x3f8   : > { %v1689_v44 = vsel %vm1677_vm5, %v1672_v32, %v1558_v0  ;;  %v1543_v0 = vmul.f32 3.9, %v2358_v29  ;;  %v1490_v29 = vcvt.s32.f32 %v3093_v11 }
 0x3f9   : > { %v1614_v5 = vpop.permute.xlu1 %1613  ;;  %v3161_v2 = vsel %vm1694_vm6, %v1689_v44, %v1574_v59 }
 0x3fa   : > { %v1653_v62 = vsel %vm1643_vm3, %v2356_v53, %v1614_v5 }
 0x3fb   : > { %v1670_v7 = vsel %vm1660_vm4, %v1653_v62, %v1540_v13 }
 0x3fc   : > { %v1687_v63 = vsel %vm1677_vm5, %v1670_v7, %v1556_v34 }
 0x3fd   : > { %v3166_v14 = vpop.xlane.xlu0 %1307  ;;  %v3169_v8 = vsel %vm1694_vm6, %v1687_v63, %v1572_v15  ;;  %v1485_v63 = vcvt.s32.f32 %v3016_v55 }
 0x3fe   : > { %vm1334_vm1 = vcmp.eq.s32.totalorder %v3055_v47, %v3166_v14 }
 0x3ff   : > { %v2007_v22 = vsel %vm1334_vm1, 1.0, %v2451_v51 }
 0x400   : > { %v1430_v21 = vmul.f32 %v2007_v22, %v2928_v19  ;;  %v1501_v22 = vmul.f32 0.5235988, %v1485_v63 }
 0x401   : > { %v3175_v48 = vpop.xlane.xlu0 %1301 }
 0x402   : > { %vm1332_vm7 = vcmp.eq.s32.totalorder %v3055_v47, %v3175_v48  ;;  %v1468_v54 = vsel %vm1272_vm2, %v1430_v21, 0.0 }
 0x403   : > { %v2005_v3 = vsel %vm1332_vm7, 1.0, %v2451_v51  ;;  %1469 = vadd.xlane.f32.xlu0 %v1468_v54 }
 0x404   : > { %v1428_v20 = vmul.f32 %v2005_v3, %v2933_v25  ;;  %v1486_v3 = vcvt.s32.f32 %v3023_v57 }
 0x405   : > { %v3182_v38 = vpop.xlane.xlu0 %1319 }
 0x406   : > { %vm1338_vm8 = vcmp.eq.s32.totalorder %v3055_v47, %v3182_v38  ;;  %v1462_v10 = vsel %vm1272_vm2, %v1428_v20, 0.0  ;;  %v2381_v20 = vld [vmem:[%s2570_s13 + $0x78] sm:$0xff]  ;;  %s2033_s13 = sshll.u32 %s2522_s9, 10  ;;  %s2385_s9 = scalar_lea.vmem %s3300_s21, 1024 }
 0x407   : > { %v2011_v19 = vsel %vm1338_vm8, 1.0, %v2451_v51  ;;  %1463 = vadd.xlane.f32.xlu0 %v1462_v10  ;;  %v1191_v10 = vadd.f32 %v2381_v20, %v2951_v6  ;;  %v1488_v6 = vcvt.s32.f32 %v3102_v17  ;;  %s3298_s24 = scalar_lea.hbm %s3392_s7, %s2033_s13  ;;  %p2386_p11 = scmp.ne.s32.totalorder %s3300_s21, %s2385_s9 }
 0x408   : > { %v1434_v27 = vmul.f32 %v2011_v19, %v2958_v46  ;;  %v1502_v19 = vmul.f32 0.5235988, %v1486_v3  ;;  %p2393_p1 = scmp.lt.s32.totalorder %s2391_s10, %s2385_s9 }
 0x409   : > { %v3189_v28 = vpop.xlane.xlu0 %1313  ;;  %p2387_p12 = pnand %p2386_p11, %p2539_p5 }
 0x40a   : > { %vm1336_vm9 = vcmp.eq.s32.totalorder %v3055_v47, %v3189_v28  ;;  %v1480_v25 = vsel %vm1272_vm2, %v1434_v27, 0.0  ;;  %p2394_p2 = por %p2393_p1, %p2392_p0 }
 0x40b   : > { %v2009_v33 = vsel %vm1336_vm9, 1.0, %v2451_v51  ;;  %1481 = vadd.xlane.f32.xlu0 %v1480_v25  ;;  %v1506_v25 = vmul.f32 0.5235988, %v1490_v29  ;;  %p2388_p13 = pneg %p2387_p12 }
 0x40c   : > { %v1432_v1 = vmul.f32 %v2009_v33, %v2970_v56  ;;  %v1190_v56 = vadd.f32 %v2380_v45, %v2968_v49 }
 0x40d   : > { %v1620_v31 = vpop.permute.xlu0 %1619  ;;  %p2395_p3 = pnand %p2394_p2, %p2388_p13 }
 0x40e   : > { %v1656_v46 = vsel %vm1643_vm3, %v2360_v18, %v1620_v31  ;;  %v1474_v32 = vsel %vm1272_vm2, %v1432_v1, 0.0  ;;  %v1504_v18 = vmul.f32 0.5235988, %v1488_v6 }
 0x40f   : > { %v1673_v59 = vsel %vm1660_vm4, %v1656_v46, %v1543_v0  ;;  %1475 = vadd.xlane.f32.xlu0 %v1474_v32  ;;  %v1489_v32 = vcvt.s32.f32 %v3065_v41 }
 0x410   : > { %v1690_v44 = vsel %vm1677_vm5, %v1673_v59, %v1559_v35 }
 0x411   : > { %v3201_v53 = vsel %vm1694_vm6, %v1690_v44, %v1575_v61  ;;  %v1505_v61 = vmul.f32 0.5235988, %v1489_v32  ;;  %v1487_v44 = vcvt.s32.f32 %v3074_v50 }
 0x425   : > { %1623 = vrot.lane.b32.xlu0 %v1190_v56, %s2450_s12 }
 0x42a   : > { %v3206_v13 = vpop.xlane.xlu1 %1316 }
 0x42b   : > { %vm1337_vm10 = vcmp.eq.s32.totalorder %v3055_v47, %v3206_v13 }
 0x42c   : > { %v2010_v5 = vsel %vm1337_vm10, 1.0, %v2451_v51 }
 0x42d   : > { %v1433_v34 = vmul.f32 %v2010_v5, %v2974_v26  ;;  %v1483_v26 = vcvt.s32.f32 %v3020_v52  ;;  %v1503_v5 = vmul.f32 0.5235988, %v1487_v44 }
 0x42e   : > { %v3212_v62 = vpop.xlane.xlu1 %1310 }
 0x42f   : > { %vm1335_vm11 = vcmp.eq.s32.totalorder %v3055_v47, %v3212_v62  ;;  %v1477_v7 = vsel %vm1272_vm2, %v1433_v34, 0.0  ;;  %v1499_v47 = vmul.f32 0.5235988, %v1483_v26 }
 0x430   : > { %v2008_v49 = vsel %vm1335_vm11, 1.0, %v2451_v51  ;;  %1478 = vadd.xlane.f32.xlu1 %v1477_v7 }
 0x431   : > { %v1431_v15 = vmul.f32 %v2008_v49, %v2996_v9 }
 0x432   : > { %v1622_v11 = vpop.permute.xlu1 %1621 }
 0x433   : > { %v1471_v43 = vsel %vm1272_vm2, %v1431_v15, 0.0  ;;  %vm1792_vm2 = vcmask 351496  }
 0x434   : > { %1472 = vadd.xlane.f32.xlu1 %v1471_v43 }
 0x43e   : > { %v1443_v21 = vpop.xlane.xlu0 %1442 }
 0x43f   : > { %v1517_v54 = vadd.f32 %v1501_v22, %v1443_v21 }
 0x441   : > { %v1714_v51 = vsel %vm1711_vm12, %v2979_v30, %v1517_v54 }
 0x442   : > { %1748 = vrot.lane.b32.xlu0 %v1714_v51, %s2452_s18  ;;  %v1437_v9 = vpop.xlane.xlu0 %1436  ;;  %v1492_v51 = vcvt.s32.f32 %v3175_v48  ;;  %v1496_v48 = vcvt.s32.f32 %v3189_v28 }
 0x443   : > { %v1515_v55 = vadd.f32 %v1499_v47, %v1437_v9  ;;  %v2383_v9 = vld [vmem:[%s2729_s25 + $0x70] sm:$0xff] }
 0x444   : > { %v1994_v20 = vmul.f32 -1.442695, %v2383_v9 }
 0x445   : > { %1625 = vrot.lane.b32.xlu1 %v1191_v10, %s2450_s12  ;;  %v1712_v52 = vsel %vm1711_vm12, %v2990_v58, %v1515_v55 }
 0x446   : > { %v1446_v27 = vpop.xlane.xlu0 %1445  ;;  %1744 = vrot.lane.b32.xlu0 %v1712_v52, %s2452_s18 }
 0x447   : > { %v1518_v57 = vadd.f32 %v1502_v19, %v1446_v27  ;;  %v1508_v19 = vmul.f32 0.5235988, %v1492_v51 }
 0x449   : > { %v1715_v30 = vsel %vm1711_vm12, %v3005_v39, %v1518_v57  ;;  %v1484_v39 = vcvt.s32.f32 %v3060_v37 }
 0x44a   : > { %1750 = vrot.lane.b32.xlu1 %v1715_v30, %s2452_s18 }
 0x44b   : > { %v1500_v46 = vmul.f32 0.5235988, %v1484_v39 }
 0x44f   : > { %v1458_v33 = vpop.xlane.xlu0 %1457 }
 0x450   : > { %v1522_v1 = vadd.f32 %v1506_v25, %v1458_v33  ;;  %v1512_v33 = vmul.f32 0.5235988, %v1496_v48 }
 0x452   : > { %v1719_v58 = vsel %vm1711_vm12, %v3088_v42, %v1522_v1 }
 0x453   : > { %v1452_v0 = vpop.xlane.xlu0 %1451 }
 0x454   : > { %v1520_v31 = vadd.f32 %v1504_v18, %v1452_v0 }
 0x456   : > { %v1717_v35 = vsel %vm1711_vm12, %v3096_v40, %v1520_v31  ;;  %v2382_v40 = vld [vmem:[%s2729_s25 + $0x68] sm:$0xff] }
 0x457   : > { %v1993_v34 = vmul.f32 -1.442695, %v2382_v40  ;;  %v1218_v22 = vmul.f32 1.442695, %v2382_v40 }
 0x459   : > { %2361 = vpow2.f32 %v1993_v34 }
 0x45a   : > { %2363 = vpow2.f32 %v1218_v22 }
 0x463   : > { %v1440_v59 = vpop.xlane.xlu1 %1439 }
 0x464   : > { %v1516_v17 = vadd.f32 %v1500_v46, %v1440_v59 }
 0x466   : > { %v1713_v42 = vsel %vm1711_vm12, %v3029_v36, %v1516_v17  ;;  %v1493_v36 = vcvt.s32.f32 %v3142_v12  ;;  %v2362_v15 = vpop.eup %2361 }
 0x467   : > { %v1455_v45 = vpop.xlane.xlu1 %1454  ;;  %1746 = vrot.lane.b32.xlu1 %v1713_v42, %s2452_s18  ;;  %v1077_v26 = vadd.f32 1.0, %v2362_v15  ;;  %v2364_v55 = vpop.eup %2363 }
 0x468   : > { %v1521_v56 = vadd.f32 %v1505_v61, %v1455_v45  ;;  %v1509_v49 = vmul.f32 0.5235988, %v1493_v36  ;;  %v1544_v30 = vmul.f32 3.9, %v2364_v55  ;;  %v1560_v6 = vmul.f32 1.6, %v2364_v55 }
 0x469   : > { %2365 = vrcp.f32 %v1077_v26 }
 0x46a   : > { %v1718_v37 = vsel %vm1711_vm12, %v3035_v16, %v1521_v56  ;;  %v1491_v16 = vcvt.s32.f32 %v3148_v24  ;;  %v1494_v24 = vcvt.s32.f32 %v3166_v14  ;;  %2367 = vpow2.f32 %v1994_v20 }
 0x46b   : > { %v1449_v7 = vpop.xlane.xlu1 %1448  ;;  %1758 = vrot.lane.b32.xlu1 %v1719_v58, %s2452_s18  ;;  %1756 = vrot.lane.b32.xlu0 %v1718_v37, %s2452_s18  ;;  %v1576_v58 = vmul.f32 1.56, %v2364_v55 }
 0x46c   : > { %v1519_v41 = vadd.f32 %v1503_v5, %v1449_v7  ;;  %v1507_v21 = vmul.f32 0.5235988, %v1491_v16  ;;  %v1510_v3 = vmul.f32 0.5235988, %v1494_v24  ;;  %v1497_v5 = vcvt.s32.f32 %v3206_v13 }
 0x46e   : > { %v1716_v50 = vsel %vm1711_vm12, %v3042_v23, %v1519_v41  ;;  %v1513_v7 = vmul.f32 0.5235988, %v1497_v5  ;;  %v1495_v41 = vcvt.s32.f32 %v3212_v62 }
 0x46f   : > { %1754 = vrot.lane.b32.xlu1 %v1717_v35, %s2452_s18  ;;  %1752 = vrot.lane.b32.xlu0 %v1716_v50, %s2452_s18  ;;  %v2384_v35 = vld [vmem:[%s2729_s25 + $0x78] sm:$0xff] }
 0x470   : > { %v1995_v39 = vmul.f32 -1.442695, %v2384_v35  ;;  %v1222_v59 = vmul.f32 1.442695, %v2384_v35  ;;  %v1511_v62 = vmul.f32 0.5235988, %v1495_v41 }
 0x472   : > { %2369 = vpow2.f32 %v1995_v39 }
 0x476   : > { %v2366_v27 = vpop.eup %2365 }
 0x477   : > { %v1657_v57 = vsel %vm1643_vm3, %v2366_v27, %v1622_v11  ;;  %v1220_v11 = vmul.f32 1.442695, %v2383_v9 }
 0x478   : > { %v1674_v25 = vsel %vm1660_vm4, %v1657_v57, %v1544_v30 }
 0x479   : > { %v1691_v1 = vsel %vm1677_vm5, %v1674_v25, %v1560_v6  ;;  %2371 = vpow2.f32 %v1220_v11 }
 0x47a   : > { %v1708_v31 = vsel %vm1694_vm6, %v1691_v1, %v1576_v58 }
 0x47c   : > { %v1467_v43 = vpop.xlane.xlu1 %1466 }
 0x47d   : > { %v1525_v63 = vadd.f32 %v1509_v49, %v1467_v43 }
 0x47f   : > { %v1722_v23 = vsel %vm1711_vm12, %v3114_v60, %v1525_v63 }
 0x480   : > { %v1461_v54 = vpop.xlane.xlu1 %1460  ;;  %1764 = vrot.lane.b32.xlu0 %v1722_v23, %s2452_s18 }
 0x481   : > { %v1523_v47 = vadd.f32 %v1507_v21, %v1461_v54 }
 0x483   : > { %v1720_v12 = vsel %vm1711_vm12, %v3123_v4, %v1523_v47 }
 0x484   : > { %1760 = vrot.lane.b32.xlu0 %v1720_v12, %s2452_s18 }
 0x48c   : > { %v1470_v10 = vpop.xlane.xlu0 %1469 }
 0x48d   : > { %v1526_v60 = vadd.f32 %v1510_v3, %v1470_v10 }
 0x48f   : > { %v1723_v52 = vsel %vm1711_vm12, %v3161_v2, %v1526_v60 }
 0x490   : > { %1766 = vrot.lane.b32.xlu1 %v1723_v52, %s2452_s18  ;;  %v1464_v4 = vpop.xlane.xlu0 %1463 }
 0x491   : > { %v1524_v14 = vadd.f32 %v1508_v19, %v1464_v4 }
 0x493   : > { %v1721_v29 = vsel %vm1711_vm12, %v3169_v8, %v1524_v14  ;;  %v2368_v8 = vpop.eup %2367 }
 0x494   : > { %1762 = vrot.lane.b32.xlu1 %v1721_v29, %s2452_s18  ;;  %v3276_v2 = vpop.xlane.xlu0 %1481  ;;  %v1078_v46 = vadd.f32 1.0, %v2368_v8  ;;  %v2370_v32 = vpop.eup %2369 }
 0x495   : > { %v2372_v61 = vpop.eup %2371  ;;  %v1079_v44 = vadd.f32 1.0, %v2370_v32 }
 0x496   : > { %2373 = vrcp.f32 %v1078_v46  ;;  %v1545_v56 = vmul.f32 3.9, %v2372_v61  ;;  %v1561_v34 = vmul.f32 1.6, %v2372_v61  ;;  %v1577_v16 = vmul.f32 1.56, %v2372_v61 }
 0x497   : > { %2375 = vpow2.f32 %v1222_v59 }
 0x498   : > { %v1476_v18 = vpop.xlane.xlu0 %1475  ;;  %2377 = vrcp.f32 %v1079_v44 }
 0x499   : > { %v1528_v0 = vadd.f32 %v1512_v33, %v1476_v18 }
 0x49b   : > { %v1725_v28 = vsel %vm1711_vm12, %v1708_v31, %v1528_v0 }
 0x49c   : > { %1770 = vrot.lane.b32.xlu1 %v1725_v28, %s2452_s18  ;;  %v1624_v17 = vpop.permute.xlu0 %1623 }
 0x4a3   : > { %v2374_v42 = vpop.eup %2373 }
 0x4a4   : > { %v1658_v45 = vsel %vm1643_vm3, %v2374_v42, %v1624_v17 }
 0x4a5   : > { %v1675_v40 = vsel %vm1660_vm4, %v1658_v45, %v1545_v56 }
 0x4a6   : > { %v1692_v50 = vsel %vm1677_vm5, %v1675_v40, %v1561_v34 }
 0x4a7   : > { %v1709_v13 = vsel %vm1694_vm6, %v1692_v50, %v1577_v16 }
 0x4b4   : > { %v1749_v37 = vpop.permute.xlu0 %1748 }
 0x4b5   : > { %1795 = vst.msk [vmem:[%s2729_s25 + $0x10] sm:$0xff] %vm1792_vm2, %v1749_v37 }
 0x4b8   : > { %v1745_v36 = vpop.permute.xlu0 %1744 }
 0x4b9   : > { %1793 = vst.msk [vmem:[%s2729_s25] sm:$0xff] %vm1792_vm2, %v1745_v36  ;;  %v1479_v49 = vpop.xlane.xlu1 %1478 }
 0x4ba   : > { %v1529_v15 = vadd.f32 %v1513_v7, %v1479_v49 }
 0x4bc   : > { %v1726_v43 = vsel %vm1711_vm12, %v1709_v13, %v1529_v15 }
 0x4bd   : > { %v1473_v63 = vpop.xlane.xlu1 %1472 }
 0x4be   : > { %2398 = shalt.err (!%p2395_p3)
}
 0x4bf   : > { %s2399_s17 = scalar_lea.hbm %s3298_s24, 1024  ;;  %s2403_s22 = scalar_lea.hbm %s3392_s7, 2048 }
 0x4c0   : > { %p2400_p4 = scmp.ne.s32.totalorder %s3298_s24, %s2399_s17  ;;  %p2404_p9 = scmp.lt.s32.totalorder %s3298_s24, %s3392_s7 }
 0x4c1   : > { %p2405_p10 = scmp.lt.s32.totalorder %s2403_s22, %s2399_s17 }
 0x4c2   : > { %p2401_p7 = pnand %p2400_p4, %p2539_p5 }
 0x4c3   : > { %p2406_p11 = por %p2405_p10, %p2404_p9 }
 0x4c4   : > { %p2402_p8 = pneg %p2401_p7 }
 0x4c6   : > { %p2407_p12 = pnand %p2406_p11, %p2402_p8 }
 0x4c8   : > { %2410 = shalt.err (!%p2407_p12)
}
 0x4c9   : > { %s2454_s9 = smov 64   ;;  %s2455_s26 = smov 4   ;;  %v2376_v22 = vpop.eup %2375  ;;  %v1498_v26 = vcvt.s32.f32 %v3182_v38  ;;  %v1527_v21 = vadd.f32 %v1511_v62, %v1473_v63  ;;  %v1626_v12 = vpop.permute.xlu1 %1625 }
 0x4ca   : > { %2220 = dma.vmem_to_hbm [thread:$0]  (%p2539_p5), %s3300_s21, 1024, %s3298_s24, %s3305_s19, %s2454_s9, %s2454_s9, %s2455_s26   ;;  %v2378_v54 = vpop.eup %2377  ;;  %v1546_v47 = vmul.f32 3.9, %v2376_v22  ;;  %v1562_v3 = vmul.f32 1.6, %v2376_v22 }
 0x4cb   : > { %v1724_v23 = vsel %vm1711_vm12, %v3201_v53, %v1527_v21  ;;  %v1514_v24 = vmul.f32 0.5235988, %v1498_v26  ;;  %v1659_v51 = vsel %vm1643_vm3, %v2378_v54, %v1626_v12  ;;  %v1578_v38 = vmul.f32 1.56, %v2376_v22 }
 0x4cc   : > { %1768 = vrot.lane.b32.xlu0 %v1724_v23, %s2452_s18  ;;  %v1676_v9 = vsel %vm1660_vm4, %v1659_v51, %v1546_v47 }
 0x4cd   : > { %v1530_v20 = vadd.f32 %v1514_v24, %v3276_v2  ;;  %v1693_v53 = vsel %vm1677_vm5, %v1676_v9, %v1562_v3  ;;  %v1751_v10 = vpop.permute.xlu1 %1750 }
 0x4ce   : > { %v1710_v60 = vsel %vm1694_vm6, %v1693_v53, %v1578_v38  ;;  %1796 = vst.msk [vmem:[%s2729_s25 + $0x18] sm:$0xff] %vm1792_vm2, %v1751_v10 }
 0x4cf   : > { %v1727_v55 = vsel %vm1711_vm12, %v1710_v60, %v1530_v20 }
 0x4d0   : > { %1772 = vrot.lane.b32.xlu0 %v1726_v43, %s2452_s18  ;;  %1774 = vrot.lane.b32.xlu1 %v1727_v55, %s2452_s18 }
 0x4d9   : > { %v1747_v19 = vpop.permute.xlu1 %1746 }
 0x4da   : > { %1794 = vst.msk [vmem:[%s2729_s25 + $0x8] sm:$0xff] %vm1792_vm2, %v1747_v19 }
 0x4dd   : > { %v1759_v52 = vpop.permute.xlu1 %1758  ;;  %v1757_v27 = vpop.permute.xlu0 %1756 }
 0x4de   : > { %1800 = vst.msk [vmem:[%s2729_s25 + $0x38] sm:$0xff] %vm1792_vm2, %v1759_v52  ;;  %1799 = vst.msk [vmem:[%s2729_s25 + $0x30] sm:$0xff] %vm1792_vm2, %v1757_v27 }
 0x4e1   : > { %v1755_v4 = vpop.permute.xlu1 %1754  ;;  %v1753_v57 = vpop.permute.xlu0 %1752 }
 0x4e2   : > { %1798 = vst.msk [vmem:[%s2729_s25 + $0x28] sm:$0xff] %vm1792_vm2, %v1755_v4  ;;  %1797 = vst.msk [vmem:[%s2729_s25 + $0x20] sm:$0xff] %vm1792_vm2, %v1753_v57 }
 0x4f2   : > { %v1765_v14 = vpop.permute.xlu0 %1764 }
 0x4f3   : > { %1803 = vst.msk [vmem:[%s2729_s25 + $0x50] sm:$0xff] %vm1792_vm2, %v1765_v14 }
 0x4f6   : > { %v1761_v30 = vpop.permute.xlu0 %1760 }
 0x4f7   : > { %1801 = vst.msk [vmem:[%s2729_s25 + $0x40] sm:$0xff] %vm1792_vm2, %v1761_v30 }
 0x502   : > { %v1767_v48 = vpop.permute.xlu1 %1766 }
 0x503   : > { %1804 = vst.msk [vmem:[%s2729_s25 + $0x58] sm:$0xff] %vm1792_vm2, %v1767_v48 }
 0x506   : > { %v1763_v29 = vpop.permute.xlu1 %1762 }
 0x507   : > { %1802 = vst.msk [vmem:[%s2729_s25 + $0x48] sm:$0xff] %vm1792_vm2, %v1763_v29 }
 0x50e   : > { %v1771_v25 = vpop.permute.xlu1 %1770 }
 0x50f   : > { %1806 = vst.msk [vmem:[%s2729_s25 + $0x68] sm:$0xff] %vm1792_vm2, %v1771_v25 }
 0x53e   : > { %v1769_v2 = vpop.permute.xlu0 %1768 }
 0x53f   : > { %1805 = vst.msk [vmem:[%s2729_s25 + $0x60] sm:$0xff] %vm1792_vm2, %v1769_v2 }
 0x542   : > { %v1773_v6 = vpop.permute.xlu0 %1772  ;;  %v1775_v33 = vpop.permute.xlu1 %1774 }
 0x543   : > { %1807 = vst.msk [vmem:[%s2729_s25 + $0x70] sm:$0xff] %vm1792_vm2, %v1773_v6  ;;  %1808 = vst.msk [vmem:[%s2729_s25 + $0x78] sm:$0xff] %vm1792_vm2, %v1775_v33 }
 0x544 PF: > { %p2226_p5 = scmp.ge.s32.totalorder %s2445_s30, 2  ;;  %s1847_s15 = sand.u32 1, %s2433_s27  }
 0x545   : > { %s1848_s18 = scalar_lea.sflag [#allocation3], %s1847_s15 }
 0x546   : > { %p2223_p13 = pnand %p2226_p5, %p2543_p6 }
 0x548   : > { %p2224_p0 = pneg %p2223_p13 }
 0x54a   : > { %2428 = dma.done.wait (%p2224_p0), %s1848_s18, 1024  }
 0x54b   : > { %2430 = vsyncadd (%p2224_p0), %s1848_s18, 4294966272  ;;  %p19_p1 = scmp.ge.s32.totalorder %s2526_s11, 4   ;;  %s3396_s27 = smov %s2437_s28 }
 0x54c   : > { %s3397_s28 = smov %s2441_s29  ;;  %s3398_s29 = smov %s2537_s14 }
 0x54d   : > { %s3399_s30 = smov %s2526_s11  ;;  %21 = sbr.rel (!%p19_p1) target bundleno = 3 (0x3), region = 95 }
 0x552   :  { %1861 = vsyncpa [#allocation3], 1 }
 0x553   :  { %1863 = vsyncpa [#allocation3 + $0x1], 1 }

</bundles_post_ra>
